<compile_context>
chip_gen: v7x
topology: tpu7x:2x2x1
jax: 0.10.0
libtpu: 0.0.40
codegen_flags: <defaults>
</compile_context>

<pallas_src>
import functools

import jax
import jax.numpy as jnp
from jax.experimental import pallas as pl
from jax.experimental.pallas import tpu as pltpu


def _round_up(x, m):
    return (x + m - 1) // m * m


# ---------------------- pltpu.roll direction probe ----------------------------

def _probe_roll_sign():
    """+1 if pltpu.roll matches jnp.roll (out[i] = x[i - shift]), -1 for the
    opposite convention, None if the primitive fails to lower."""
    def kernel(x_ref, o_ref):
        o_ref[...] = pltpu.roll(x_ref[...], 1, axis=0)
    try:
        x = jnp.arange(8 * 128, dtype=jnp.float32).reshape(8, 128)
        y = jax.block_until_ready(pl.pallas_call(
            kernel, out_shape=jax.ShapeDtypeStruct((8, 128), jnp.float32))(x))
        return 1 if float(y[1, 0]) == float(x[0, 0]) else -1
    except Exception:       # pragma: no cover - fall back to jnp.roll
        return None


_ROLL_SIGN = _probe_roll_sign()


def _roll_rows_up(x, s, n):
    """y[r] = x[(r + s) % n] along axis 0 (s is a static Python int)."""
    s = s % n
    if s == 0:
        return x
    if _ROLL_SIGN is not None:
        return pltpu.roll(x, (-_ROLL_SIGN * s) % n, axis=0)   # XLU rotate
    return jnp.roll(x, -s, axis=0)


# ----------------------------- Pallas kernels ---------------------------------

def _bias_relu_pool_store(acc, b_ref, o_ref, pool):
    """Fused epilogue: bias add + ReLU in f32, optional 2x2 max-pool, store."""
    Ho, Wo, Cb = o_ref.shape[1], o_ref.shape[2], o_ref.shape[3]
    y = jnp.maximum(acc + b_ref[...], jnp.float32(0.0))        # (H*W, Cb) f32
    if pool:
        # rows of `acc` are (h, w) row-major with H = 2*Ho, W = 2*Wo.
        y = y.reshape(Ho, 2, Wo, 2, Cb)
        y = jnp.max(y, axis=3)
        y = jnp.max(y, axis=1)
    else:
        y = y.reshape(Ho, Wo, Cb)
    o_ref[0] = y.astype(o_ref.dtype)


def _conv3x3_relu_pool_kernel(x_ref, w_ref, b_ref, o_ref, patch_ref, *,
                              hw, pool):
    # x_ref:     (1, H*W, Cin)       bf16 activations, one sample (flattened)
    # w_ref:     (9*Cin, Cout_blk)   bf16
    # b_ref:     (1, Cout_blk)       f32
    # o_ref:     (1, Ho, Wo, Cout_blk)
    # patch_ref: (H*W, 9*Cin)        bf16 VMEM scratch, built once per sample
    H, W = hw
    HW, Cin = x_ref.shape[1], x_ref.shape[2]

    # Build the im2col patch only for the first Cout block of each sample.
    # The co grid axis is 'arbitrary' (sequential on a core), so the later
    # Cout blocks of the same sample reuse the scratch as-is.
    @pl.when(pl.program_id(1) == 0)
    def _build_patch():
        x = x_ref[0].astype(jnp.float32)                        # (HW, Cin)
        r = jax.lax.broadcasted_iota(jnp.int32, (HW, Cin), 0)   # flat row idx
        hh = r // W
        ww = r % W
        for dy in range(3):
            for dx in range(3):
                t = dy * 3 + dx
                s = (dy - 1) * W + (dx - 1)        # flat offset of this tap
                shifted = _roll_rows_up(x, s, HW)
                valid = ((hh + (dy - 1) >= 0) & (hh + (dy - 1) < H) &
                         (ww + (dx - 1) >= 0) & (ww + (dx - 1) < W))
                # one dense, full-height strip store per tap; the SAME-padding
                # halo zeros come from the mask, not from scratch zeroing.
                patch_ref[:, t * Cin:(t + 1) * Cin] = (
                    jnp.where(valid, shifted, jnp.float32(0.0))
                    .astype(patch_ref.dtype))

    # One big-K contraction on the MXU, f32 accumulation.
    acc = jnp.dot(patch_ref[...], w_ref[...],
                  preferred_element_type=jnp.float32)
    _bias_relu_pool_store(acc, b_ref, o_ref, pool)


def _patch_matmul_relu_pool_kernel(p_ref, w_ref, b_ref, o_ref, *, pool):
    # First layer (Cin == 1): patches pre-built in the wrapper.
    # p_ref: (1, H*W, 9); w_ref: (9, Cout_blk); b_ref: (1, Cout_blk)
    acc = jnp.dot(p_ref[0], w_ref[...], preferred_element_type=jnp.float32)
    _bias_relu_pool_store(acc, b_ref, o_ref, pool)


def _maxpool2_kernel(x_ref, o_ref):
    # Fallback (only used when a ReLU activation is itself requested).
    x = x_ref[0]                     # (Hh, 2, Wh, 2, C)
    x = jnp.max(x, axis=3)
    o_ref[0] = jnp.max(x, axis=1)


def _absdiff_sum_kernel(a_ref, b_ref, o_ref, acc_ref):
    # a_ref/b_ref: (N, rows_blk, 128) f32 (pre-scaled, concatenated segments).
    # Lane-wise accumulation into (N, 128); cross-lane sum only in the epilogue.
    k = pl.program_id(0)

    @pl.when(k == 0)
    def _():
        acc_ref[...] = jnp.zeros_like(acc_ref)

    d = jnp.abs(a_ref[...] - b_ref[...])
    acc_ref[...] += jnp.sum(d, axis=1)

    @pl.when(k == pl.num_programs(0) - 1)
    def _():
        o_ref[...] = jnp.sum(acc_ref[...], axis=1, keepdims=True)


# -------------------------------- wrappers -------------------------------------

def _cout_tile(cout):
    """Lane-dense Cout tile: full Cout up to 128; 256 on v6e/v7x (2x256x256
    MXU), 128 on v5e (4x128x128 MXUs) for the wider layers."""
    if cout <= 128:
        return cout
    kind = jax.devices()[0].device_kind.lower()
    is_v5e = ("v5 lite" in kind) or ("v5e" in kind) or ("v5lite" in kind)
    return 128 if is_v5e else min(cout, 256)


def conv3x3_relu_pool(x, w, b, *, pool):
    """Fused 3x3 SAME conv + bias + ReLU (+ optional 2x2 max-pool).

    x: (N, H, W, Cin) bf16;  w: (3, 3, Cin, Cout) bf16;  b: (Cout,) f32.
    """
    N, H, W, Cin = x.shape
    Cout = w.shape[-1]
    if pool:
        assert H % 2 == 0 and W % 2 == 0, "2x2 max-pool needs even H, W"
    Ho, Wo = (H // 2, W // 2) if pool else (H, W)

    cout_t = _cout_tile(Cout)
    assert Cout % cout_t == 0
    n_co = Cout // cout_t
    b2 = b.reshape(1, Cout).astype(jnp.float32)
    itemsize = jnp.dtype(x.dtype).itemsize

    if Cin == 1:
        # First layer: a C=1 lane dim would waste 127/128 lanes.  im2col in the
        # wrapper to (N, H*W, 9) and matmul against (9, Cout).
        xp = jnp.pad(x[..., 0], ((0, 0), (1, 1), (1, 1)))
        taps = [xp[:, dy:dy + H, dx:dx + W]
                for dy in range(3) for dx in range(3)]
        patches = jnp.stack(taps, axis=-1).reshape(N, H * W, 9)
        w2 = w.reshape(9, Cout)
        kernel = functools.partial(_patch_matmul_relu_pool_kernel, pool=pool)
        in_specs = [
            pl.BlockSpec((1, H * W, 9), lambda n, co: (n, 0, 0)),
            pl.BlockSpec((9, cout_t), lambda n, co: (0, co)),
            pl.BlockSpec((1, cout_t), lambda n, co: (0, co)),
        ]
        operands = (patches, w2, b2)
        scratch_shapes = ()
        in_bytes = H * W * 9 * itemsize
        w_bytes = 9 * cout_t * itemsize
        scratch_bytes = 0
        # no cross-co scratch reuse here -> both axes may be megacore-sharded.
        dim_sem = ("parallel", "parallel")
    else:
        # Per-tap channel stride == Cin (no zero K-padding): taps stay
        # lane-aligned for Cin >= 128 and pack two taps per 128-lane group for
        # Cin == 64 (cheap masked strip stores, half the MXU work vs padding).
        assert Cin % 64 == 0, "in-kernel im2col path expects Cin % 64 == 0"
        K = 9 * Cin
        x2 = x.reshape(N, H * W, Cin)
        w2 = w.reshape(K, Cout)
        kernel = functools.partial(_conv3x3_relu_pool_kernel,
                                   hw=(H, W), pool=pool)
        in_specs = [
            pl.BlockSpec((1, H * W, Cin), lambda n, co: (n, 0, 0)),
            # NOTE: the weight block depends on co (innermost axis) and is
            # re-fetched per Cout block; n stays outer / co inner so the
            # im2col scratch is reused across co (the refetch pipelines).
            pl.BlockSpec((K, cout_t), lambda n, co: (0, co)),
            pl.BlockSpec((1, cout_t), lambda n, co: (0, co)),
        ]
        operands = (x2, w2, b2)
        scratch_shapes = (pltpu.VMEM((H * W, K), x.dtype),)
        in_bytes = H * W * Cin * itemsize
        w_bytes = K * cout_t * itemsize
        scratch_bytes = H * W * K * itemsize
        # co must be sequential on a core (patch built only at co == 0);
        # the batch axis stays 'parallel' for megacore.
        dim_sem = ("parallel", "arbitrary")

    out_dtype = x.dtype
    out_bytes = Ho * Wo * cout_t * jnp.dtype(out_dtype).itemsize
    # in/w/b/out are double-buffered by the pipeline, the scratch is
    # single-buffered; ~25% headroom, capped at 32 MiB (v7x: 64 MiB VMEM/TC).
    vmem_needed = 2 * (in_bytes + w_bytes + cout_t * 4 + out_bytes) + scratch_bytes
    vmem_limit = int(min(32 * 2**20, max(4 * 2**20, (vmem_needed * 5) // 4)))

    return pl.pallas_call(
        kernel,
        out_shape=jax.ShapeDtypeStruct((N, Ho, Wo, Cout), out_dtype),
        grid_spec=pltpu.PrefetchScalarGridSpec(
            num_scalar_prefetch=0,
            grid=(N, n_co),
            in_specs=in_specs,
            out_specs=pl.BlockSpec((1, Ho, Wo, cout_t),
                                   lambda n, co: (n, 0, 0, co)),
            scratch_shapes=scratch_shapes),
        compiler_params=pltpu.CompilerParams(
            dimension_semantics=dim_sem,
            vmem_limit_bytes=vmem_limit),
    )(*operands)


def maxpool2x2(x):
    # Standalone pool; only reached when a ReLU output is itself requested
    # (never the case for the pool-index layer_ids used here).
    N, H, W, C = x.shape
    assert H % 2 == 0 and W % 2 == 0, "2x2 max-pool needs even H, W"
    Hh, Wh = H // 2, W // 2
    xr = x.reshape(N, Hh, 2, Wh, 2, C)
    return pl.pallas_call(
        _maxpool2_kernel,
        out_shape=jax.ShapeDtypeStruct((N, Hh, Wh, C), x.dtype),
        grid=(N,),
        in_specs=[pl.BlockSpec((1, Hh, 2, Wh, 2, C),
                               lambda n: (n, 0, 0, 0, 0, 0))],
        out_specs=pl.BlockSpec((1, Hh, Wh, C), lambda n: (n, 0, 0, 0)),
        compiler_params=pltpu.CompilerParams(
            dimension_semantics=("parallel",)),
    )(xr)


def fused_l1_mean_per_sample(pairs):
    """sum_i mean_per_sample(|a_i - b_i|) over a list of (a, b) pairs in ONE
    pallas_call.  Each segment is pre-scaled by 1/K_i (|a-b|/K == |a/K - b/K|)
    so the kernel only sums absolute differences."""
    N = pairs[0][0].shape[0]
    segs_a, segs_b = [], []
    for a, b in pairs:
        a2 = a.reshape(N, -1).astype(jnp.float32)
        b2 = b.reshape(N, -1).astype(jnp.float32)
        inv = jnp.float32(1.0 / a2.shape[1])
        segs_a.append(a2 * inv)
        segs_b.append(b2 * inv)
    A = jnp.concatenate(segs_a, axis=1)
    B = jnp.concatenate(segs_b, axis=1)
    K = A.shape[1]

    # Lane-dense (N, rows, 128) layout; zero padding contributes 0 to |a - b|.
    rows = pl.cdiv(K, 128)
    rows_blk = rows if rows <= 1024 else 512      # block stays a few hundred KB
    rows_pad = _round_up(rows, rows_blk)
    kp = rows_pad * 128
    if kp != K:
        A = jnp.pad(A, ((0, 0), (0, kp - K)))
        B = jnp.pad(B, ((0, 0), (0, kp - K)))
    A3 = A.reshape(N, rows_pad, 128)
    B3 = B.reshape(N, rows_pad, 128)
    nk = rows_pad // rows_blk

    out = pl.pallas_call(
        _absdiff_sum_kernel,
        out_shape=jax.ShapeDtypeStruct((N, 1), jnp.float32),
        grid_spec=pltpu.PrefetchScalarGridSpec(
            num_scalar_prefetch=0,
            grid=(nk,),
            in_specs=[pl.BlockSpec((N, rows_blk, 128), lambda k: (0, k, 0)),
                      pl.BlockSpec((N, rows_blk, 128), lambda k: (0, k, 0))],
            out_specs=pl.BlockSpec((N, 1), lambda k: (0, 0)),
            scratch_shapes=(pltpu.VMEM((N, 128), jnp.float32),)),
        compiler_params=pltpu.CompilerParams(
            dimension_semantics=("arbitrary",)),
    )(A3, B3)
    return out[:, 0]


# --------------------------- VGGish feature trunk ------------------------------

VGGISH_FEATURES = [
    ("conv", 1, 64), ("relu",), ("pool",),
    ("conv", 64, 128), ("relu",), ("pool",),
    ("conv", 128, 256), ("relu",), ("conv", 256, 256), ("relu",), ("pool",),
    ("conv", 256, 512), ("relu",), ("conv", 512, 512), ("relu",), ("pool",),
]


def init_vggish_params(key, last_layer):
    # TODO(synk): the pretrained COLA/TF encoder checkpoint cannot be loaded
    # here; deterministic synthetic weights keep the same architecture.
    params = {}
    for i, spec in enumerate(VGGISH_FEATURES[: last_layer + 1]):
        if spec[0] == "conv":
            _, cin, cout = spec
            key, kw, kb = jax.random.split(key, 3)
            w = jax.random.normal(kw, (3, 3, cin, cout), jnp.float32)
            w = (w / jnp.sqrt(jnp.float32(cin * 9))).astype(jnp.bfloat16)
            b = 0.01 * jax.random.normal(kb, (cout,), jnp.float32)
            params[i] = (w, b)
    return params


def vggish_features(x, params, layer_ids):
    # Run layers 0..layer_ids[-1], collecting activations at requested indices.
    # conv+ReLU (and the following max-pool when its input is not requested)
    # execute as ONE fused Pallas kernel.
    layer_ids = tuple(layer_ids)
    last = layer_ids[-1]
    outs = {}
    i = 0
    while i <= last:
        kind = VGGISH_FEATURES[i][0]
        if kind == "conv":
            # TODO(synk): pre-ReLU conv activations cannot be requested with
            # the fused kernel (VGGish layer_ids never ask for them).
            assert i not in layer_ids
            w, b = params[i]
            next_is_pool = (i + 2 < len(VGGISH_FEATURES)
                            and VGGISH_FEATURES[i + 2][0] == "pool")
            fuse_pool = (next_is_pool and i + 2 <= last
                         and (i + 1) not in layer_ids)
            x = conv3x3_relu_pool(x, w, b, pool=fuse_pool)
            top = i + 2 if fuse_pool else i + 1
            if top in layer_ids:
                outs[top] = x
            i = top + 1
        elif kind == "pool":
            x = maxpool2x2(x)
            if i in layer_ids:
                outs[i] = x
            i += 1
        else:
            raise AssertionError("ReLU is always fused into the preceding conv")
    return [outs[j] for j in layer_ids]


def vggish_distance(s1_nchw, s2_nchw, params, layer_ids):
    # TODO(synk): the original module restores a pretrained COLA encoder from a
    # TF checkpoint and takes the MSE of its final embeddings; without that
    # checkpoint a deterministic synthetic trunk + per-layer L1 feature
    # distance (the previously reviewed behaviour) stands in for it.
    s1 = jnp.transpose(s1_nchw, (0, 2, 3, 1)).astype(jnp.float32)  # NCHW->NHWC
    s2 = jnp.transpose(s2_nchw, (0, 2, 3, 1)).astype(jnp.float32)
    # bf16 activations through the trunk; all accumulation / epilogues / the
    # |a-b| reductions stay in f32 (~1% tolerance vs an f32 reference).
    f1 = vggish_features(s1.astype(jnp.bfloat16), params, layer_ids)
    f2 = vggish_features(s2.astype(jnp.bfloat16), params, layer_ids)
    pairs = [(s1, s2)] + list(zip(f1, f2))
    loss = fused_l1_mean_per_sample(pairs)      # one kernel for all pairs
    return jnp.mean(loss)


# ------------------------ pure-JAX references (checks) --------------------------

def _reference_features(x_nhwc, params, layer_ids):
    """lax.conv reference of the bf16 trunk (f32 math, bf16 round-trip at the
    same points as the Pallas path).  Used only for the in-script check."""
    x = x_nhwc.astype(jnp.bfloat16).astype(jnp.float32)
    outs = {}
    last = max(layer_ids)
    for i, spec in enumerate(VGGISH_FEATURES[: last + 1]):
        kind = spec[0]
        if kind == "conv":
            w, b = params[i]
            x = jax.lax.conv_general_dilated(
                x, w.astype(jnp.float32), window_strides=(1, 1), padding="SAME",
                dimension_numbers=("NHWC", "HWIO", "NHWC")) + b
        elif kind == "relu":
            x = jnp.maximum(x, 0.0)
        else:  # pool
            n, h, w_, c = x.shape
            x = x.reshape(n, h // 2, 2, w_ // 2, 2, c).max(axis=(2, 4))
            x = x.astype(jnp.bfloat16).astype(jnp.float32)  # fused-block output
        if i in layer_ids:
            outs[i] = x
    return [outs[j] for j in layer_ids]


# ----------------------------------- main ---------------------------------------

if __name__ == "__main__":
    layer_ids = (2, 5)   # features after the first two MaxPool layers
    key = jax.random.PRNGKey(0)
    kp, k1, k2 = jax.random.split(key, 3)
    params = init_vggish_params(kp, layer_ids[-1])

    # PyTorch-convention NCHW log-mel inputs: batch=2, channels=1, 16x16.
    s1 = jax.random.normal(k1, (2, 1, 16, 16), jnp.float32)
    s2 = jax.random.normal(k2, (2, 1, 16, 16), jnp.float32)

    # --- in-script correctness checks vs pure-JAX references (loose bf16 tol) --
    s1_nhwc = jnp.transpose(s1, (0, 2, 3, 1))
    got = vggish_features(s1_nhwc.astype(jnp.bfloat16), params, layer_ids)
    want = _reference_features(s1_nhwc, params, layer_ids)
    for g, r in zip(got, want):
        err = float(jnp.max(jnp.abs(g.astype(jnp.float32) - r)))
        assert err < 0.2, f"conv trunk mismatch vs reference: max|diff|={err}"

    ka, kb = jax.random.split(k1)
    xa = jax.random.normal(ka, (2, 3, 7, 11), jnp.float32)
    xb = jax.random.normal(kb, (2, 3, 7, 11), jnp.float32)
    got_r = fused_l1_mean_per_sample([(xa, xb), (2.0 * xa, xb)])
    want_r = (jnp.mean(jnp.abs(xa - xb).reshape(2, -1), axis=1)
              + jnp.mean(jnp.abs(2.0 * xa - xb).reshape(2, -1), axis=1))
    err_r = float(jnp.max(jnp.abs(got_r - want_r)))
    assert err_r < 1e-4, f"reduction mismatch vs reference: {err_r}"

    # ----------------------------------- run ----------------------------------
    fn = jax.jit(functools.partial(vggish_distance, layer_ids=layer_ids))
    loss = fn(s1, s2, params)
    loss = jax.block_until_ready(loss)
    assert loss.shape == () and bool(jnp.isfinite(loss))
    print("KERNEL_OK")
</pallas_src>

<mosaic_0001>
module attributes {stable_mosaic.version = 11 : i64} {
  func.func @kernel(%arg0: memref<8x128xf32, #tpu.memory_space<vmem>>, %arg1: memref<8x128xf32, #tpu.memory_space<vmem>>) attributes {dimension_semantics = [], scalar_prefetch = 0 : i64, scratch_operands = 0 : i64, tpu.core_type = #tpu.core_type<tc>} {
    %c0 = arith.constant 0 : index
    %c0_0 = arith.constant 0 : index
    %0 = vector.load %arg0[%c0, %c0_0] : memref<8x128xf32, #tpu.memory_space<vmem>>, vector<8x128xf32>
    %c1_i32 = arith.constant 1 : i32
    %1 = tpu.dynamic_rotate %0 by %c1_i32 dim 0 : vector<8x128xf32>, i32 -> vector<8x128xf32>
    %c0_1 = arith.constant 0 : index
    %c0_2 = arith.constant 0 : index
    %2 = vector.load %arg1[%c0_1, %c0_2] : memref<8x128xf32, #tpu.memory_space<vmem>>, vector<8x128xf32>
    tpu.vector_store %arg1[%c0_1, %c0_2], %1 {strides = array<i32>} : memref<8x128xf32, #tpu.memory_space<vmem>>, vector<8x128xf32>,
    return
  }
}

module attributes {stable_mosaic.version = 11 : i64} {
  func.func @_patch_matmul_relu_pool_kernel(%arg0: i32, %arg1: i32, %arg2: memref<1x256x9xbf16, #tpu.memory_space<vmem>>, %arg3: memref<9x64xbf16, #tpu.memory_space<vmem>>, %arg4: memref<1x64xf32, #tpu.memory_space<vmem>>, %arg5: memref<1x8x8x64xbf16, #tpu.memory_space<vmem>>) attributes {dimension_semantics = [#tpu.dimension_semantics<parallel>, #tpu.dimension_semantics<parallel>], iteration_bounds = array<i64: 2, 1>, scalar_prefetch = 0 : i64, scratch_operands = 0 : i64, tpu.core_type = #tpu.core_type<tc>, window_params = [{transform_indices = @transform_0, window_bounds = array<i64: 1, 256, 9>}, {transform_indices = @transform_1, window_bounds = array<i64: 9, 64>}, {transform_indices = @transform_2, window_bounds = array<i64: 1, 64>}, {transform_indices = @transform_3, window_bounds = array<i64: 1, 8, 8, 64>}]} {
    %c0 = arith.constant 0 : index
    %c0_0 = arith.constant 0 : index
    %c0_1 = arith.constant 0 : index
    %0 = vector.load %arg2[%c0, %c0_0, %c0_1] : memref<1x256x9xbf16, #tpu.memory_space<vmem>>, vector<1x256x9xbf16>
    %1 = vector.shape_cast %0 : vector<1x256x9xbf16> to vector<256x9xbf16>
    %c0_2 = arith.constant 0 : index
    %c0_3 = arith.constant 0 : index
    %2 = vector.load %arg3[%c0_2, %c0_3] : memref<9x64xbf16, #tpu.memory_space<vmem>>, vector<9x64xbf16>
    %cst = arith.constant dense<0.000000e+00> : vector<256x64xf32>
    %3 = tpu.matmul %1, %2, %cst {dimension_numbers = #tpu.dot_dimension_numbers<[1], [0], [0], [1], [0, 0, 1, 1], [], []>} : vector<256x9xbf16>, vector<9x64xbf16>, vector<256x64xf32> -> vector<256x64xf32>
    %c0_4 = arith.constant 0 : index
    %c0_5 = arith.constant 0 : index
    %4 = vector.load %arg4[%c0_4, %c0_5] : memref<1x64xf32, #tpu.memory_space<vmem>>, vector<1x64xf32>
    %5 = vector.broadcast %4 : vector<1x64xf32> to vector<256x64xf32>
    %6 = arith.addf %3, %5 : vector<256x64xf32>
    %cst_6 = arith.constant 0.000000e+00 : f32
    %7 = vector.broadcast %cst_6 : f32 to vector<256x64xf32>
    %8 = arith.maximumf %6, %7 : vector<256x64xf32>
    %9 = vector.shape_cast %8 : vector<256x64xf32> to vector<8x2x8x2x64xf32>
    %cst_7 = arith.constant dense<0xFF800000> : vector<8x2x8x64xf32>
    %10 = vector.multi_reduction <maximumf>, %9, %cst_7 [3] : vector<8x2x8x2x64xf32> to vector<8x2x8x64xf32>
    %cst_8 = arith.constant dense<0xFF800000> : vector<8x8x64xf32>
    %11 = vector.multi_reduction <maximumf>, %10, %cst_8 [1] : vector<8x2x8x64xf32> to vector<8x8x64xf32>
    %12 = arith.truncf %11 : vector<8x8x64xf32> to vector<8x8x64xbf16>
    %c0_9 = arith.constant 0 : index
    %c0_10 = arith.constant 0 : index
    %c0_11 = arith.constant 0 : index
    %c0_12 = arith.constant 0 : index
    %13 = vector.load %arg5[%c0_9, %c0_10, %c0_11, %c0_12] : memref<1x8x8x64xbf16, #tpu.memory_space<vmem>>, vector<1x8x8x64xbf16>
    %14 = vector.shape_cast %13 : vector<1x8x8x64xbf16> to vector<8x8x64xbf16>
    %15 = vector.shape_cast %12 : vector<8x8x64xbf16> to vector<1x8x8x64xbf16>
    tpu.vector_store %arg5[%c0_9, %c0_10, %c0_11, %c0_12], %15 {strides = array<i32>} : memref<1x8x8x64xbf16, #tpu.memory_space<vmem>>, vector<1x8x8x64xbf16>,
    return
  }
  func.func @transform_0(%arg0: i32, %arg1: i32) -> (i32, i32, i32) {
    %c0_i32 = arith.constant 0 : i32
    %c0_i32_0 = arith.constant 0 : i32
    %c0_i32_1 = arith.constant 0 : i32
    return %arg0, %c0_i32, %c0_i32_0 : i32, i32, i32
  }
  func.func @transform_1(%arg0: i32, %arg1: i32) -> (i32, i32) {
    %c0_i32 = arith.constant 0 : i32
    %c0_i32_0 = arith.constant 0 : i32
    return %c0_i32, %arg1 : i32, i32
  }
  func.func @transform_2(%arg0: i32, %arg1: i32) -> (i32, i32) {
    %c0_i32 = arith.constant 0 : i32
    %c0_i32_0 = arith.constant 0 : i32
    return %c0_i32, %arg1 : i32, i32
  }
  func.func @transform_3(%arg0: i32, %arg1: i32) -> (i32, i32, i32, i32) {
    %c0_i32 = arith.constant 0 : i32
    %c0_i32_0 = arith.constant 0 : i32
    %c0_i32_1 = arith.constant 0 : i32
    return %arg0, %c0_i32, %c0_i32_0, %arg1 : i32, i32, i32, i32
  }
}

</mosaic_0001>

<bundles_post_ra>
// kernel: tpu_custom_call.1
= control target key start
LH: loop header
LB: loop body
LE: loop exit
PB: predicated region body
PF: predicated region fallthrough
CT: control target
= control target key end

     0   :  { %6 = vsyncpa [#allocation3], 0  ;;  %s125_s0 = inlined_call_operand.hbm [shape: f32[8,128], index: 0, kind: input, shape index: {}]   ;;  %s126_s1 = inlined_call_operand.hbm [shape: f32[8,128], index: 1, kind: output, shape index: {}]  }
   0x1   :  { %7 = vsyncpa [#allocation4], 0  ;;  %s89_s6 = smov [#allocation2]   ;;  %s41_s10 = scalar_lea.hbm %s125_s0, 128 }
   0x2   :  { %s14_s7 = sshll.u32 %s89_s6, 4  ;;  %p42_p0 = scmp.ne.s32.totalorder %s125_s0, %s41_s10  ;;  %s15_s7 = int_to_ptr.vmem [resolvable:$true] %s14_s7 }
   0x3   :  { %p45_p1 = scmp.lt.u32.totalorder %s41_s10, %s125_s0 }
   0x5   :  { %p47_p2 = pnand %p45_p1, %p42_p0 }
   0x7   :  { %50 = shalt.err (!%p47_p2)
}
   0x8   :  { %s51_s15 = scalar_lea.vmem %s15_s7, 128  ;;  %p56_p4 = scmp.lt.s32.totalorder %s15_s7, %s15_s7 }
   0x9   :  { %p52_p3 = scmp.ne.s32.totalorder %s15_s7, %s51_s15  ;;  %p57_p5 = scmp.lt.s32.totalorder %s51_s15, %s51_s15 }
   0xb   :  { %p58_p6 = por %p57_p5, %p56_p4 }
   0xd   :  { %p59_p7 = pnand %p58_p6, %p52_p3 }
   0xf   :  { %62 = shalt.err (!%p59_p7)
}
  0x10   :  { %17 = dma.hbm_to_vmem [thread:$0]  %s125_s0, 128, %s15_s7, [#allocation3]  }
  0x11   :  { %85 = dma.done.wait [#allocation3], 128  }
  0x12   :  { %86 = vsyncadd [#allocation3], 4294967168  ;;  %s90_s18 = smov [#allocation5]   ;;  %v21_v0 = vld [vmem:[#allocation2] sm:$0xff] }
  0x13   :  { %s30_s19 = sshll.u32 %s90_s18, 4  ;;  %v22_v1 = vrot.slane %v21_v0, 7  ;;  %s31_s19 = int_to_ptr.vmem [resolvable:$true] %s30_s19 }
  0x14   :  { %s63_s20 = scalar_lea.vmem %s31_s19, 128  ;;  %p68_p9 = scmp.lt.s32.totalorder %s31_s19, %s31_s19 }
  0x15   :  { %23 = vst [vmem:[#allocation5] sm:$0xff] %v22_v1  ;;  %p64_p8 = scmp.ne.s32.totalorder %s31_s19, %s63_s20  ;;  %p69_p10 = scmp.lt.s32.totalorder %s63_s20, %s63_s20 }
  0x17   :  { %p70_p11 = por %p69_p10, %p68_p9 }
  0x19   :  { %p71_p12 = pnand %p70_p11, %p64_p8 }
  0x1b   :  { %74 = shalt.err (!%p71_p12)
}
  0x1c   :  { %s75_s23 = scalar_lea.hbm %s126_s1, 128 }
  0x1d   :  { %p76_p13 = scmp.ne.s32.totalorder %s126_s1, %s75_s23  ;;  %p79_p0 = scmp.lt.u32.totalorder %s75_s23, %s126_s1 }
  0x1f   :  { %p81_p1 = pnand %p79_p0, %p76_p13 }
  0x21   :  { %84 = shalt.err (!%p81_p1)
}
  0x22   :  { %33 = dma.vmem_to_hbm [thread:$0]  %s31_s19, 128, %s126_s1, [#allocation4]  }
  0x23   :  { %87 = dma.done.wait [#allocation4], 128  }
  0x24   :  { %88 = vsyncadd [#allocation4], 4294967168 }
  0x25   :  { %37 = vsyncpa [#allocation3], 1 }
  0x26   :  { %38 = vsyncpa [#allocation4], 1 }

// kernel: tpu_custom_call.1
= control target key start
LH: loop header
LB: loop body
LE: loop exit
PB: predicated region body
PF: predicated region fallthrough
CT: control target
= control target key end

     0   :  { %8 = vsyncpa [#allocation3], 0  ;;  %s4300_s0 = inlined_call_operand.vmem [shape: bf16[2,256,9], index: 0, kind: input, shape index: {}]   ;;  %s4301_s1 = inlined_call_operand.vmem [shape: bf16[9,64], index: 1, kind: input, shape index: {}]   ;;  %s4302_s2 = inlined_call_operand.vmem [shape: f32[1,64], index: 2, kind: input, shape index: {}]   ;;  %s4303_s3 = inlined_call_operand.hbm [shape: bf16[2,8,8,64], index: 3, kind: output, shape index: {}]  }
   0x1   :  { %10 = vsyncpa [#allocation3 + $0x1], 0  ;;  %s3321_s12 = smov 0   ;;  %s3323_s13 = smov 0  }
   0x2   :  { %s3325_s14 = smov 0   ;;  %s3327_s15 = smov 0  }
   0x3   :  { %s3329_s16 = smov 0   ;;  %s3331_s17 = smov 0  }
   0x4 LB: > { %s2906_s18 = sadd.s32 4294967295, %s3294_s17   ;;  %s2907_s19 = sadd.s32 4294967294, %s3294_s17   ;;  %s3294_s17 = sphi %s3331_s17, %s16_s17   ;;  %s3290_s16 = sphi %s3329_s16, %s4310_s16   ;;  %s3286_s15 = sphi %s3327_s15, %s4309_s15   ;;  %s3282_s14 = sphi %s3325_s14, %s4308_s14   ;;  %s3278_s13 = sphi %s3323_s13, %s4307_s13   ;;  %s3274_s12 = sphi %s3321_s12, %s4306_s12  }
   0x5   : > { %s28_s20 = sadd.s32 1, %s3290_s16  ;;  %s115_s21 = sadd.s32 1, %s3282_s14 }
   0x6   : > { %p30_p0 = scmp.ge.s32.totalorder %s28_s20, 2  ;;  %p125_p1 = scmp.ne.s32.totalorder %s3282_s14, %s3278_s13 }
   0x7   : > { %p126_p2 = scmp.eq.s32.totalorder %s2906_s18, 1  ;;  %p131_p3 = scmp.ne.s32.totalorder %s3278_s13, %s3274_s12 }
   0x8   : > { %s4312_s20 = smov (%p30_p0, %s28_s20), 0  ;;  %p132_p5 = scmp.eq.s32.totalorder %s2907_s19, 1 }
   0x9   : > { %p3361_p4 = por %p126_p2, %p125_p1  ;;  %s110_s23 = ssub.s32 %s3290_s16, %s4312_s20 }
   0xa   : > { %p2912_p6 = scmp.ge.s32.totalorder %s3294_s17, 1  ;;  %p113_p7 = scmp.eq.s32.totalorder %s110_s23, 0 }
   0xb   : > { %p3368_p8 = por %p132_p5, %p131_p3  ;;  %p171_p9 = scmp.lt.s32.totalorder %s3294_s17, 3 }
   0xc   : > { %s3374_s25 = scalar_select %p113_p7, %s3282_s14, %s115_s21  }
   0xd   : > { %p172_p10 = pnand %p2912_p6, %p171_p9 }
   0xe   : > { %v3197_v0 = vld [vmem:[%s4301_s1] sm:$0x1f] (!%p172_p10)   ;;  %vm390_vm0 = vcmask (!%p172_p10), 1043456   ;;  %vm391_vm1 = vcmask (!%p172_p10), 1044480   ;;  %p202_p11 = scmp.lt.s32.totalorder (!%p172_p10), %s3286_s15, 1  ;;  %v3296_v1 = vmov (!%p172_p10), 65535   ;;  %v626_v23 = vlaneseq (!%p172_p10) }
   0xf   : > { %175 = sbr.rel (%p172_p10) target bundleno = 641 (0x281), region = 32  ;;  %v392_v2 = vsel (!%p172_p10), %vm390_vm0, 4294967295, %v3296_v1  ;;  %vm341_vm2 = vcmask (!%p172_p10), 72704   ;;  %v3297_v21 = vmov (!%p172_p10), 1983009808   ;;  %vm1294_vm3 = vcmask (!%p172_p10), 517120  }
  0x10   : > { %v393_v3 = vsel (!%p172_p10), %vm391_vm1, %v392_v2, 0  ;;  %v624_v22 = vunpack.c.l.s4 (!%p172_p10), %v3297_v21  ;;  %v627_v25 = vshrl.u32 (!%p172_p10), %v626_v23, 7  ;;  %v3421_v26 = vld [vmem:[%s4302_s2] ss:$0 sm:$0xff] (!%p172_p10)  ;;  %vm2191_vm4 = vcmask (!%p172_p10), 523264   ;;  %s199_s8 = sand.u32 (!%p172_p10), 1, %s3278_s13  }
  0x11   : > { %v395_v4 = vand.u32 (!%p172_p10), %v3197_v0, %v393_v3  ;;  %vm2704_vm5 = vcmask (!%p172_p10), 1041409   ;;  %vm2706_vm6 = vcmask (!%p172_p10), 1042434   ;;  %vm2708_vm7 = vcmask (!%p172_p10), 1043459   ;;  %s2913_s9 = sshll.u32 (!%p172_p10), %s199_s8, 5  ;;  %s3084_s23 = sshll.u32 (!%p172_p10), %s3286_s15, 9 }
  0x12   : > { %v625_v24 = vunpack.c.0.s8 (!%p172_p10), %v624_v22  ;;  %vm2710_vm8 = vcmask (!%p172_p10), 1044484   ;;  %vm2712_vm9 = vcmask (!%p172_p10), 1045509   ;;  %vm2714_vm10 = vcmask (!%p172_p10), 1046534   ;;  %s3647_s10 = scalar_lea.vmem (!%p172_p10), [#allocation2], %s2913_s9  ;;  %s4254_s30 = scalar_lea.sflag (!%p172_p10), [#allocation3], %s199_s8 }
  0x13   : > { %3102 = vmatprep.subr.bf16.mxu0 (!%p172_p10), %v395_v4  ;;  %3136 = vmatprep.subr.bf16.mxu1 (!%p172_p10), %v395_v4  ;;  %vm2716_vm11 = vcmask (!%p172_p10), 1047559   ;;  %vm2783_vm12 = vcmask (!%p172_p10), 519168   ;;  %s2807_s26 = sshll.u32 (!%p172_p10), %s3647_s10, 4  ;;  %s3298_s4 = smov (!%p172_p10), [#allocation2]   ;;  %s4248_s26 = int_to_ptr.vmem [resolvable:$true] %s2807_s26 }
  0x14   : > { %3103 = vmatpush3.bf16.msra.mxu0 (!%p172_p10), %v395_v4  ;;  %3137 = vmatpush3.bf16.msra.mxu1 (!%p172_p10), %v395_v4  ;;  %v3424_v29 = vsub.s32 (!%p172_p10), %v625_v24, %v627_v25 }
  0x16   : > { %s203_s28 = scalar_select %p202_p11, %s3286_s15, 1 }
  0x17   : > { %s3216_s15 = scalar_lea.vmem %s4248_s26, 512 }
  0x18   : > { %s3019_s29 = sshll.u32 %s203_s28, 7  ;;  %p3217_p12 = scmp.ne.s32.totalorder %s4248_s26, %s3216_s15 }
  0x19   : > { %s3384_s5 = scalar_lea.vmem %s4300_s0, %s3019_s29  ;;  %s4246_s29 = scalar_lea.hbm %s4303_s3, %s3084_s23 }
  0x1a   : > { %v3198_v5 = vld [vmem:[%s3384_s5] sm:$0xff]   ;;  %v3200_v7 = vld [vmem:[%s3384_s5 + $0x8] sm:$0xff]   ;;  %v3202_v9 = vld [vmem:[%s3384_s5 + $0x10] sm:$0xff]   ;;  %p3218_p13 = pnand %p3217_p12, %p3361_p4 }
  0x1b   : > { %v3199_v6 = vld [vmem:[%s3384_s5 + $0x40] sm:$0xff]   ;;  %3104 = vmatprep.mubr.msk.bf16.mxu0 %vm341_vm2, %v3198_v5  ;;  %v3201_v8 = vld [vmem:[%s3384_s5 + $0x48] sm:$0xff]   ;;  %v3203_v10 = vld [vmem:[%s3384_s5 + $0x50] sm:$0xff]  }
  0x1c   : > { %3120 = vmatprep.mubr.msk.bf16.mxu1 %vm341_vm2, %v3199_v6  ;;  %3105 = vmatmul.mubr.msk.bf16.vlgmr.msra.gmra.mrb[0].mxu0 %vm341_vm2, %v3200_v7  ;;  %v3204_v11 = vld [vmem:[%s3384_s5 + $0x18] sm:$0xff]   ;;  %v3206_v13 = vld [vmem:[%s3384_s5 + $0x20] sm:$0xff]   ;;  %v3208_v15 = vld [vmem:[%s3384_s5 + $0x28] sm:$0xff]   ;;  %p3219_p0 = pneg %p3218_p13 }
  0x1d   : > { %3121 = vmatmul.mubr.msk.bf16.vlgmr.msra.gmra.mrb[0].mxu1 %vm341_vm2, %v3201_v8  ;;  %3108 = vmatprep.mubr.msk.bf16.mxu0 %vm341_vm2, %v3202_v9  ;;  %v3205_v12 = vld [vmem:[%s3384_s5 + $0x58] sm:$0xff]   ;;  %v3207_v14 = vld [vmem:[%s3384_s5 + $0x60] sm:$0xff]   ;;  %v3209_v16 = vld [vmem:[%s3384_s5 + $0x68] sm:$0xff]  }
  0x1e   : > { %3124 = vmatprep.mubr.msk.bf16.mxu1 %vm341_vm2, %v3203_v10  ;;  %v3210_v17 = vld [vmem:[%s3384_s5 + $0x30] sm:$0xff]   ;;  %v3212_v19 = vld [vmem:[%s3384_s5 + $0x38] sm:$0xff]  }
  0x1f   : > { %v3211_v18 = vld [vmem:[%s3384_s5 + $0x70] sm:$0xff]   ;;  %v3213_v20 = vld [vmem:[%s3384_s5 + $0x78] sm:$0xff]   ;;  %s3220_s5 = sshll.u32 %s3298_s4, 4  ;;  %s3221_s5 = int_to_ptr.vmem [resolvable:$false] %s3220_s5 }
  0x20   : > { %s3222_s6 = scalar_lea.vmem %s3221_s5, 1024  ;;  %p3223_p1 = scmp.lt.s32.totalorder %s4248_s26, %s3221_s5 }
  0x21   : > { %p3224_p2 = scmp.lt.s32.totalorder %s3222_s6, %s3216_s15 }
  0x23   : > { %p3225_p3 = por %p3224_p2, %p3223_p1 }
  0x24   : > { %3109 = vmatmul.mubr.msk.bf16.gmra.mrb[4].mxu0 %vm341_vm2, %v3204_v11 }
  0x25   : > { %3125 = vmatmul.mubr.msk.bf16.gmra.mrb[4].mxu1 %vm341_vm2, %v3205_v12  ;;  %3112 = vmatprep.mubr.msk.bf16.mxu0 %vm341_vm2, %v3206_v13  ;;  %p3226_p5 = pnand %p3225_p3, %p3219_p0 }
  0x26   : > { %3128 = vmatprep.mubr.msk.bf16.mxu1 %vm341_vm2, %v3207_v14 }
  0x2c   : > { %3113 = vmatmul.mubr.msk.bf16.gmra.mrb[8].mxu0 %vm341_vm2, %v3208_v15 }
  0x2d   : > { %3129 = vmatmul.mubr.msk.bf16.gmra.mrb[8].mxu1 %vm341_vm2, %v3209_v16  ;;  %3116 = vmatprep.mubr.msk.bf16.mxu0 %vm341_vm2, %v3210_v17 }
  0x2e   : > { %3132 = vmatprep.mubr.msk.bf16.mxu1 %vm341_vm2, %v3211_v18 }
  0x34   : > { %3117 = vmatmul.mubr.msk.bf16.gmra.mrb[12].mxu0 %vm341_vm2, %v3212_v19 }
  0x35   : > { %3133 = vmatmul.mubr.msk.bf16.gmra.mrb[12].mxu1 %vm341_vm2, %v3213_v20 }
  0xef   : > { %v3106_v27 = vpop.f32.mrb[0].mxu0 }
  0xf0   : > { %v440_v28 = vadd.f32 %v3106_v27, %v3421_v26  ;;  %v3122_v30 = vpop.f32.mrb[0].mxu1  ;;  %v431_v31 = vpop.f32.mrb[1].mxu0 }
  0xf1   : > { %v504_v32 = vadd.f32 %v3122_v30, %v3421_v26  ;;  %v432_v33 = vadd.f32 %v3421_v26, %v431_v31  ;;  %v495_v34 = vpop.f32.mrb[1].mxu1  ;;  %v3107_v35 = vpop.f32.mrb[2].mxu0 }
  0xf2   : > { %v560_v36 = vmax.f32 %v440_v28, 0.0  ;;  %v496_v37 = vadd.f32 %v3421_v26, %v495_v34  ;;  %v443_v38 = vadd.f32 %v3107_v35, %v3421_v26  ;;  %v3123_v39 = vpop.f32.mrb[2].mxu1  ;;  %v434_v40 = vpop.f32.mrb[3].mxu0 }
  0xf3   : > { %v576_v41 = vmax.f32 %v504_v32, 0.0  ;;  %v3430_v42 = vmax.f32 %v432_v33, 0.0  ;;  %v3433_v43 = vadd.f32 %v3123_v39, %v3421_v26  ;;  %v3436_v44 = vadd.f32 %v3421_v26, %v434_v40  ;;  %v3438_v45 = vpop.f32.mrb[3].mxu1 }
  0xf4   : > { %v656_v46 = vcombine.high %v560_v36, %v560_v36  ;;  %v663_v47 = vrot.slane %v560_v36, %v3424_v29  ;;  %v3441_v48 = vmax.f32 %v496_v37, 0.0  ;;  %v3443_v49 = vmax.f32 %v443_v38, 0.0 }
  0xf5   : > { %v928_v50 = vcombine.high %v576_v41, %v576_v41  ;;  %v935_v51 = vrot.slane %v576_v41, %v3424_v29  ;;  %v622_v52 = vcombine.high %v3430_v42, %v3430_v42  ;;  %v3450_v53 = vrot.slane %v3430_v42, %v3424_v29 }
  0xf6   : > { %v670_v54 = vrot.slane %v656_v46, %v3424_v29  ;;  %v671_v55 = vcombine.high %v663_v47, %v663_v47  ;;  %v1351_v56 = vsel %vm1294_vm3, %v663_v47, -inf  ;;  %v894_v57 = vcombine.high %v3441_v48, %v3441_v48 }
  0xf7   : > { %v1352_v58 = vrot.slane %v1351_v56, 4  ;;  %v942_v59 = vrot.slane %v928_v50, %v3424_v29  ;;  %v943_v60 = vcombine.high %v935_v51, %v935_v51  ;;  %v1799_v61 = vsel %vm1294_vm3, %v935_v51, -inf  ;;  %v3458_v62 = vpop.f32.mrb[4].mxu0 }
  0xf8   : > { %v672_v63 = vcombine.high %v670_v54, %v670_v54  ;;  %v1358_v0 = vsel %vm1294_vm3, %v671_v55, -inf  ;;  %v1365_v1 = vsel %vm1294_vm3, %v670_v54, -inf  ;;  %v1800_v2 = vrot.slane %v1799_v61, 4  ;;  %v3462_v3 = vpop.f32.mrb[4].mxu1  ;;  %v3464_v4 = vpop.f32.mrb[5].mxu0 }
  0xf9   : > { %v1353_v5 = vmax.f32 %v1351_v56, %v1352_v58  ;;  %v1359_v6 = vrot.slane %v1358_v0, 4  ;;  %v1366_v7 = vrot.slane %v1365_v1, 4  ;;  %v944_v8 = vcombine.high %v942_v59, %v942_v59  ;;  %v3466_v9 = vpop.f32.mrb[5].mxu1  ;;  %v3468_v10 = vpop.f32.mrb[6].mxu0 }
  0xfa   : > { %v1372_v11 = vsel %vm1294_vm3, %v672_v63, -inf  ;;  %v1801_v12 = vmax.f32 %v1799_v61, %v1800_v2  ;;  %v1806_v13 = vsel %vm1294_vm3, %v943_v60, -inf  ;;  %v1813_v14 = vsel %vm1294_vm3, %v942_v59, -inf  ;;  %v3473_v15 = vpop.f32.mrb[6].mxu1  ;;  %v3476_v54 = vpop.f32.mrb[7].mxu0 }
  0xfb   : > { %v1354_v16 = vrot.slane %v1353_v5, 2  ;;  %v1360_v17 = vmax.f32 %v1358_v0, %v1359_v6  ;;  %v1367_v18 = vmax.f32 %v1365_v1, %v1366_v7  ;;  %v1373_v19 = vrot.slane %v1372_v11, 4 }
  0xfc   : > { %v1802_v20 = vrot.slane %v1801_v12, 2  ;;  %v1807_v21 = vrot.slane %v1806_v13, 4  ;;  %v1814_v22 = vrot.slane %v1813_v14, 4  ;;  %v1820_v23 = vsel %vm1294_vm3, %v944_v8, -inf }
  0xfd   : > { %v1355_v24 = vmax.f32 %v1353_v5, %v1354_v16  ;;  %v1361_v25 = vrot.slane %v1360_v17, 2  ;;  %v1368_v27 = vrot.slane %v1367_v18, 2  ;;  %v1374_v28 = vmax.f32 %v1372_v11, %v1373_v19 }
  0xfe   : > { %v1803_v30 = vmax.f32 %v1801_v12, %v1802_v20  ;;  %v1808_v31 = vmax.f32 %v1806_v13, %v1807_v21  ;;  %v1815_v32 = vmax.f32 %v1813_v14, %v1814_v22  ;;  %v1821_v33 = vrot.slane %v1820_v23, 4 }
  0xff   : > { %v1356_v34 = vrot.slane %v1355_v24, 1  ;;  %v1362_v35 = vmax.f32 %v1360_v17, %v1361_v25  ;;  %v1369_v36 = vmax.f32 %v1367_v18, %v1368_v27  ;;  %v1375_v37 = vrot.slane %v1374_v28, 2 }
 0x100   : > { %v1804_v38 = vrot.slane %v1803_v30, 1  ;;  %v1809_v39 = vrot.slane %v1808_v31, 2  ;;  %v1816_v40 = vrot.slane %v1815_v32, 2  ;;  %v1822_v41 = vmax.f32 %v1820_v23, %v1821_v33 }
 0x101   : > { %v1357_v46 = vmax.f32 %v1355_v24, %v1356_v34  ;;  %v1363_v47 = vrot.slane %v1362_v35, 1  ;;  %v1370_v50 = vrot.slane %v1369_v36, 1  ;;  %v1376_v51 = vmax.f32 %v1374_v28, %v1375_v37  ;;  %v3508_v24 = vpop.f32.mrb[7].mxu1 }
 0x102   : > { %v1805_v55 = vmax.f32 %v1803_v30, %v1804_v38  ;;  %v1810_v56 = vmax.f32 %v1808_v31, %v1809_v39  ;;  %v1817_v58 = vmax.f32 %v1815_v32, %v1816_v40  ;;  %v1823_v59 = vrot.slane %v1822_v41, 2 }
 0x103   : > { %v1364_v60 = vmax.f32 %v1362_v35, %v1363_v47  ;;  %v1371_v61 = vmax.f32 %v1369_v36, %v1370_v50  ;;  %v1377_v63 = vrot.slane %v1376_v51, 1  ;;  %v3479_v0 = vsel %vm2191_vm4, %v1357_v46, -inf }
 0x104   : > { %v1811_v1 = vrot.slane %v1810_v56, 1  ;;  %v1818_v2 = vrot.slane %v1817_v58, 1  ;;  %v1824_v5 = vmax.f32 %v1822_v41, %v1823_v59  ;;  %v3482_v6 = vsel %vm2191_vm4, %v1805_v55, -inf }
 0x105   : > { %v1378_v7 = vmax.f32 %v1376_v51, %v1377_v63  ;;  %v3485_v8 = vsel %vm2191_vm4, %v1364_v60, -inf  ;;  %v3488_v11 = vsel %vm2191_vm4, %v1371_v61, -inf  ;;  %v636_v12 = vrot.slane %v622_v52, %v3424_v29 }
 0x106   : > { %v1812_v13 = vmax.f32 %v1810_v56, %v1811_v1  ;;  %v1819_v14 = vmax.f32 %v1817_v58, %v1818_v2  ;;  %v1825_v16 = vrot.slane %v1824_v5, 1  ;;  %v637_v17 = vcombine.high %v3450_v53, %v3450_v53 }
 0x107   : > { %v3497_v18 = vsel %vm2191_vm4, %v1378_v7, -inf  ;;  %v638_v19 = vcombine.high %v636_v12, %v636_v12  ;;  %v1295_v20 = vsel %vm1294_vm3, %v3450_v53, -inf  ;;  %v1309_v21 = vsel %vm1294_vm3, %v636_v12, -inf }
 0x108   : > { %v1826_v22 = vmax.f32 %v1824_v5, %v1825_v16  ;;  %v3503_v23 = vsel %vm2191_vm4, %v1812_v13, -inf  ;;  %v3506_v42 = vsel %vm2191_vm4, %v1819_v14, -inf  ;;  %v1296_v52 = vrot.slane %v1295_v20, 4 }
 0x109   : > { %v1302_v25 = vsel %vm1294_vm3, %v637_v17, -inf  ;;  %v1310_v27 = vrot.slane %v1309_v21, 4  ;;  %v1316_v28 = vsel %vm1294_vm3, %v638_v19, -inf  ;;  %v901_v53 = vrot.slane %v3441_v48, %v3424_v29 }
 0x10a   : > { %v3515_v30 = vsel %vm2191_vm4, %v1826_v22, -inf  ;;  %v1297_v31 = vmax.f32 %v1295_v20, %v1296_v52  ;;  %v1303_v32 = vrot.slane %v1302_v25, 4  ;;  %v1317_v33 = vrot.slane %v1316_v28, 4 }
 0x10b   : > { %v1311_v34 = vmax.f32 %v1309_v21, %v1310_v27  ;;  %v908_v35 = vrot.slane %v894_v57, %v3424_v29  ;;  %v909_v36 = vcombine.high %v901_v53, %v901_v53  ;;  %v1743_v37 = vsel %vm1294_vm3, %v901_v53, -inf }
 0x10c   : > { %v1298_v38 = vrot.slane %v1297_v31, 2  ;;  %v1304_v39 = vmax.f32 %v1302_v25, %v1303_v32  ;;  %v1318_v40 = vmax.f32 %v1316_v28, %v1317_v33  ;;  %v1744_v41 = vrot.slane %v1743_v37, 4 }
 0x10d   : > { %v1312_v46 = vrot.slane %v1311_v34, 2  ;;  %v910_v47 = vcombine.high %v908_v35, %v908_v35  ;;  %v1750_v50 = vsel %vm1294_vm3, %v909_v36, -inf  ;;  %v1757_v51 = vsel %vm1294_vm3, %v908_v35, -inf }
 0x10e   : > { %v1299_v55 = vmax.f32 %v1297_v31, %v1298_v38  ;;  %v1305_v56 = vrot.slane %v1304_v39, 2  ;;  %v1319_v58 = vrot.slane %v1318_v40, 2  ;;  %v1745_v59 = vmax.f32 %v1743_v37, %v1744_v41 }
 0x10f   : > { %v1313_v60 = vmax.f32 %v1311_v34, %v1312_v46  ;;  %v1751_v48 = vrot.slane %v1750_v50, 4  ;;  %v1758_v57 = vrot.slane %v1757_v51, 4  ;;  %v1764_v61 = vsel %vm1294_vm3, %v910_v47, -inf }
 0x110   : > { %v1300_v63 = vrot.slane %v1299_v55, 1  ;;  %v1306_v1 = vmax.f32 %v1304_v39, %v1305_v56  ;;  %v1320_v2 = vmax.f32 %v1318_v40, %v1319_v58  ;;  %v1746_v5 = vrot.slane %v1745_v59, 2 }
 0x111   : > { %v1314_v7 = vrot.slane %v1313_v60, 1  ;;  %v1752_v12 = vmax.f32 %v1750_v50, %v1751_v48  ;;  %v1759_v13 = vmax.f32 %v1757_v51, %v1758_v57  ;;  %v1765_v14 = vrot.slane %v1764_v61, 4 }
 0x112   : > { %v1301_v16 = vmax.f32 %v1299_v55, %v1300_v63  ;;  %v1307_v17 = vrot.slane %v1306_v1, 1  ;;  %v1321_v19 = vrot.slane %v1320_v2, 1  ;;  %v1747_v20 = vmax.f32 %v1745_v59, %v1746_v5 }
 0x113   : > { %v1315_v21 = vmax.f32 %v1313_v60, %v1314_v7  ;;  %v1753_v22 = vrot.slane %v1752_v12, 2  ;;  %v1760_v52 = vrot.slane %v1759_v13, 2  ;;  %v1766_v25 = vmax.f32 %v1764_v61, %v1765_v14 }
 0x114   : > { %v1308_v27 = vmax.f32 %v1306_v1, %v1307_v17  ;;  %v1322_v28 = vmax.f32 %v1320_v2, %v1321_v19  ;;  %v2192_v53 = vsel %vm2191_vm4, %v1301_v16, -inf  ;;  %v1748_v31 = vrot.slane %v1747_v20, 1  ;;  %v3545_v17 = vpop.f32.mrb[8].mxu0 }
 0x115   : > { %v2194_v32 = vmax.f32 %v2192_v53, %v3479_v0  ;;  %v2198_v33 = vsel %vm2191_vm4, %v1315_v21, -inf  ;;  %v1754_v34 = vmax.f32 %v1752_v12, %v1753_v22  ;;  %v1761_v35 = vmax.f32 %v1759_v13, %v1760_v52 }
 0x116   : > { %v2195_v36 = vsel %vm2191_vm4, %v1308_v27, -inf  ;;  %v2200_v37 = vmax.f32 %v2198_v33, %v3488_v11  ;;  %v2201_v38 = vsel %vm2191_vm4, %v1322_v28, -inf  ;;  %v1749_v39 = vmax.f32 %v1747_v20, %v1748_v31 }
 0x117   : > { %v2197_v40 = vmax.f32 %v2195_v36, %v3485_v8  ;;  %v2203_v41 = vmax.f32 %v2201_v38, %v3497_v18  ;;  %v3020_v46 = vpack.c.bf16 %v2194_v32, %v2194_v32  ;;  %v1755_v47 = vrot.slane %v1754_v34, 1 }
 0x118   : > { %v3022_v50 = vpack.c.bf16 %v2200_v37, %v2200_v37  ;;  %v1762_v51 = vrot.slane %v1761_v35, 1  ;;  %v1767_v0 = vrot.slane %v1766_v25, 2  ;;  %v2288_v55 = vsel %vm2191_vm4, %v1749_v39, -inf }
 0x119   : > { %v3021_v56 = vpack.c.bf16 %v2197_v40, %v2197_v40  ;;  %v3023_v58 = vpack.c.bf16 %v2203_v41, %v2203_v41  ;;  %v2640_v59 = vunpack.c.l.b16 %v3020_v46  ;;  %v1756_v60 = vmax.f32 %v1754_v34, %v1755_v47 }
 0x11a   : > { %v2642_v48 = vunpack.c.l.b16 %v3022_v50  ;;  %v1763_v11 = vmax.f32 %v1761_v35, %v1762_v51  ;;  %v1768_v57 = vmax.f32 %v1766_v25, %v1767_v0  ;;  %v2290_v61 = vmax.f32 %v2288_v55, %v3482_v6  ;;  %v3560_v0 = vpop.f32.mrb[8].mxu1 }
 0x11b   : > { %v2641_v8 = vunpack.c.l.b16 %v3021_v56  ;;  %v2643_v63 = vunpack.c.l.b16 %v3023_v58  ;;  %v2291_v18 = vsel %vm2191_vm4, %v1756_v60, -inf  ;;  %v673_v1 = vcombine.high %v3443_v49, %v3443_v49 }
 0x11c   : > { %v1769_v2 = vrot.slane %v1768_v57, 1  ;;  %v2293_v5 = vmax.f32 %v2291_v18, %v3503_v23  ;;  %v2294_v7 = vsel %vm2191_vm4, %v1763_v11, -inf  ;;  %v3052_v12 = vpack.c.bf16 %v2290_v61, %v2290_v61 }
 0x11d   : > { %v2705_v13 = vsel %vm2704_vm5, %v2641_v8, %v2640_v59  ;;  %v2296_v14 = vmax.f32 %v2294_v7, %v3506_v42  ;;  %v680_v6 = vrot.slane %v3443_v49, %v3424_v29  ;;  %v687_v16 = vrot.slane %v673_v1, %v3424_v29 }
 0x11e   : > { %v2707_v19 = vsel %vm2706_vm6, %v2642_v48, %v2705_v13  ;;  %v1770_v20 = vmax.f32 %v1768_v57, %v1769_v2  ;;  %v3053_v21 = vpack.c.bf16 %v2293_v5, %v2293_v5  ;;  %v2672_v22 = vunpack.c.l.b16 %v3052_v12 }
 0x11f   : > { %v3054_v23 = vpack.c.bf16 %v2296_v14, %v2296_v14  ;;  %v688_v52 = vcombine.high %v680_v6, %v680_v6  ;;  %v689_v25 = vcombine.high %v687_v16, %v687_v16  ;;  %v1379_v27 = vsel %vm1294_vm3, %v680_v6, -inf }
 0x120   : > { %v2297_v28 = vsel %vm2191_vm4, %v1770_v20, -inf  ;;  %v2673_v42 = vunpack.c.l.b16 %v3053_v21  ;;  %v1380_v53 = vrot.slane %v1379_v27, 4  ;;  %v1393_v49 = vsel %vm1294_vm3, %v687_v16, -inf }
 0x121   : > { %v2299_v31 = vmax.f32 %v2297_v28, %v3515_v30  ;;  %v2674_v32 = vunpack.c.l.b16 %v3054_v23  ;;  %v1386_v33 = vsel %vm1294_vm3, %v688_v52, -inf  ;;  %v1394_v34 = vrot.slane %v1393_v49, 4 }
 0x122   : > { %v2739_v35 = vsel %vm2704_vm5, %v2673_v42, %v2672_v22  ;;  %v1381_v36 = vmax.f32 %v1379_v27, %v1380_v53  ;;  %v1387_v37 = vrot.slane %v1386_v33, 4  ;;  %v1400_v38 = vsel %vm1294_vm3, %v689_v25, -inf }
 0x123   : > { %v3055_v39 = vpack.c.bf16 %v2299_v31, %v2299_v31  ;;  %v3556_v40 = vsel %vm2706_vm6, %v2674_v32, %v2739_v35  ;;  %v1395_v41 = vmax.f32 %v1393_v49, %v1394_v34  ;;  %v1401_v46 = vrot.slane %v1400_v38, 4 }
 0x124   : > { %v1382_v47 = vrot.slane %v1381_v36, 2  ;;  %v1388_v50 = vmax.f32 %v1386_v33, %v1387_v37  ;;  %v577_v30 = vmax.f32 %v3433_v43, 0.0  ;;  %v559_v51 = vmax.f32 %v3436_v44, 0.0 }
 0x125   : > { %v3562_v55 = vunpack.c.l.b16 %v3055_v39  ;;  %v1396_v56 = vrot.slane %v1395_v41, 2  ;;  %v1402_v58 = vmax.f32 %v1400_v38, %v1401_v46  ;;  %v3565_v59 = vsel %vm2708_vm7, %v2643_v63, %v2707_v19 }
 0x126   : > { %v1383_v60 = vmax.f32 %v1381_v36, %v1382_v47  ;;  %v1389_v48 = vrot.slane %v1388_v50, 2  ;;  %v945_v11 = vcombine.high %v577_v30, %v577_v30  ;;  %v952_v57 = vrot.slane %v577_v30, %v3424_v29 }
 0x127   : > { %v1397_v61 = vmax.f32 %v1395_v41, %v1396_v56  ;;  %v1403_v8 = vrot.slane %v1402_v58, 2  ;;  %v639_v18 = vcombine.high %v559_v51, %v559_v51  ;;  %v646_v43 = vrot.slane %v559_v51, %v3424_v29 }
 0x128   : > { %v1384_v44 = vrot.slane %v1383_v60, 1  ;;  %v1390_v1 = vmax.f32 %v1388_v50, %v1389_v48  ;;  %v959_v2 = vrot.slane %v945_v11, %v3424_v29  ;;  %v960_v5 = vcombine.high %v952_v57, %v952_v57 }
 0x129   : > { %v1398_v7 = vrot.slane %v1397_v61, 1  ;;  %v1404_v12 = vmax.f32 %v1402_v58, %v1403_v8  ;;  %v1827_v63 = vsel %vm1294_vm3, %v952_v57, -inf  ;;  %v653_v13 = vrot.slane %v639_v18, %v3424_v29 }
 0x12a   : > { %v1385_v14 = vmax.f32 %v1383_v60, %v1384_v44  ;;  %v1391_v6 = vrot.slane %v1390_v1, 1  ;;  %v961_v16 = vcombine.high %v959_v2, %v959_v2  ;;  %v1828_v19 = vrot.slane %v1827_v63, 4 }
 0x12b   : > { %v1399_v20 = vmax.f32 %v1397_v61, %v1398_v7  ;;  %v1405_v21 = vrot.slane %v1404_v12, 1  ;;  %v1834_v22 = vsel %vm1294_vm3, %v960_v5, -inf  ;;  %v1841_v23 = vsel %vm1294_vm3, %v959_v2, -inf  ;;  %v3590_v61 = vpop.f32.mrb[9].mxu0 }
 0x12c   : > { %v1392_v52 = vmax.f32 %v1390_v1, %v1391_v6  ;;  %v3575_v25 = vsel %vm2191_vm4, %v1385_v14, -inf  ;;  %v1829_v27 = vmax.f32 %v1827_v63, %v1828_v19  ;;  %v1835_v28 = vrot.slane %v1834_v22, 4 }
 0x12d   : > { %v1406_v42 = vmax.f32 %v1404_v12, %v1405_v21  ;;  %v3578_v53 = vsel %vm2191_vm4, %v1399_v20, -inf  ;;  %v1842_v49 = vrot.slane %v1841_v23, 4  ;;  %v1848_v31 = vsel %vm1294_vm3, %v961_v16, -inf }
 0x12e   : > { %v3582_v32 = vsel %vm2191_vm4, %v1392_v52, -inf  ;;  %v1830_v33 = vrot.slane %v1829_v27, 2  ;;  %v1836_v34 = vmax.f32 %v1834_v22, %v1835_v28  ;;  %v1849_v35 = vrot.slane %v1848_v31, 4 }
 0x12f   : > { %v3585_v36 = vsel %vm2191_vm4, %v1406_v42, -inf  ;;  %v1843_v37 = vmax.f32 %v1841_v23, %v1842_v49  ;;  %v654_v38 = vcombine.high %v646_v43, %v646_v43  ;;  %v655_v39 = vcombine.high %v653_v13, %v653_v13 }
 0x130   : > { %v1831_v41 = vmax.f32 %v1829_v27, %v1830_v33  ;;  %v1837_v46 = vrot.slane %v1836_v34, 2  ;;  %v1850_v47 = vmax.f32 %v1848_v31, %v1849_v35  ;;  %v1323_v50 = vsel %vm1294_vm3, %v646_v43, -inf  ;;  %v3596_v27 = vpop.f32.mrb[9].mxu1 }
 0x131   : > { %v1844_v30 = vrot.slane %v1843_v37, 2  ;;  %v1324_v51 = vrot.slane %v1323_v50, 4  ;;  %v1330_v56 = vsel %vm1294_vm3, %v654_v38, -inf  ;;  %v1337_v58 = vsel %vm1294_vm3, %v653_v13, -inf }
 0x132   : > { %v1832_v60 = vrot.slane %v1831_v41, 1  ;;  %v1838_v48 = vmax.f32 %v1836_v34, %v1837_v46  ;;  %v1851_v11 = vrot.slane %v1850_v47, 2  ;;  %v1331_v57 = vrot.slane %v1330_v56, 4 }
 0x133   : > { %v1845_v8 = vmax.f32 %v1843_v37, %v1844_v30  ;;  %v1325_v18 = vmax.f32 %v1323_v50, %v1324_v51  ;;  %v1338_v44 = vrot.slane %v1337_v58, 4  ;;  %v1344_v1 = vsel %vm1294_vm3, %v655_v39, -inf }
 0x134   : > { %v1833_v2 = vmax.f32 %v1831_v41, %v1832_v60  ;;  %v1839_v5 = vrot.slane %v1838_v48, 1  ;;  %v1852_v43 = vmax.f32 %v1850_v47, %v1851_v11  ;;  %v1332_v7 = vmax.f32 %v1330_v56, %v1331_v57 }
 0x135   : > { %v1846_v12 = vrot.slane %v1845_v8, 1  ;;  %v1326_v63 = vrot.slane %v1325_v18, 2  ;;  %v1339_v14 = vmax.f32 %v1337_v58, %v1338_v44  ;;  %v1345_v6 = vrot.slane %v1344_v1, 4 }
 0x136   : > { %v1840_v13 = vmax.f32 %v1838_v48, %v1839_v5  ;;  %v1853_v16 = vrot.slane %v1852_v43, 1  ;;  %v3594_v19 = vsel %vm2191_vm4, %v1833_v2, -inf  ;;  %v1333_v20 = vrot.slane %v1332_v7, 2 }
 0x137   : > { %v1847_v21 = vmax.f32 %v1845_v8, %v1846_v12  ;;  %v1327_v22 = vmax.f32 %v1325_v18, %v1326_v63  ;;  %v1340_v23 = vrot.slane %v1339_v14, 2  ;;  %v1346_v52 = vmax.f32 %v1344_v1, %v1345_v6 }
 0x138   : > { %v1854_v28 = vmax.f32 %v1852_v43, %v1853_v16  ;;  %v3599_v42 = vsel %vm2191_vm4, %v1840_v13, -inf  ;;  %v1334_v49 = vmax.f32 %v1332_v7, %v1333_v20  ;;  %v499_v31 = vadd.f32 %v3421_v26, %v3438_v45 }
 0x139   : > { %v3604_v33 = vsel %vm2191_vm4, %v1847_v21, -inf  ;;  %v1328_v34 = vrot.slane %v1327_v22, 1  ;;  %v1341_v35 = vmax.f32 %v1339_v14, %v1340_v23  ;;  %v1347_v37 = vrot.slane %v1346_v52, 2 }
 0x13a   : > { %v3607_v38 = vsel %vm2191_vm4, %v1854_v28, -inf  ;;  %v1335_v39 = vrot.slane %v1334_v49, 1  ;;  %v575_v41 = vmax.f32 %v499_v31, 0.0  ;;  %v3612_v46 = vsel %vm2708_vm7, %v3562_v55, %v3556_v40 }
 0x13b   : > { %v1329_v47 = vmax.f32 %v1327_v22, %v1328_v34  ;;  %v1342_v45 = vrot.slane %v1341_v35, 1  ;;  %v1348_v50 = vmax.f32 %v1346_v52, %v1347_v37  ;;  %v456_v30 = vadd.f32 %v3458_v62, %v3421_v26 }
 0x13c   : > { %v1336_v51 = vmax.f32 %v1334_v49, %v1335_v39  ;;  %v911_v56 = vcombine.high %v575_v41, %v575_v41  ;;  %v918_v58 = vrot.slane %v575_v41, %v3424_v29  ;;  %v520_v60 = vadd.f32 %v3462_v3, %v3421_v26 }
 0x13d   : > { %v1343_v48 = vmax.f32 %v1341_v35, %v1342_v45  ;;  %v1349_v11 = vrot.slane %v1348_v50, 1  ;;  %v2204_v57 = vsel %vm2191_vm4, %v1329_v47, -inf  ;;  %v564_v40 = vmax.f32 %v456_v30, 0.0 }
 0x13e   : > { %v2206_v55 = vmax.f32 %v2204_v57, %v3575_v25  ;;  %v2207_v8 = vsel %vm2191_vm4, %v1336_v51, -inf  ;;  %v925_v62 = vrot.slane %v911_v56, %v3424_v29  ;;  %v926_v18 = vcombine.high %v918_v58, %v918_v58  ;;  %v3644_v57 = vpop.f32.mrb[10].mxu0 }
 0x13f   : > { %v1350_v44 = vmax.f32 %v1348_v50, %v1349_v11  ;;  %v2209_v1 = vmax.f32 %v2207_v8, %v3582_v32  ;;  %v2210_v2 = vsel %vm2191_vm4, %v1343_v48, -inf  ;;  %v1771_v3 = vsel %vm1294_vm3, %v918_v58, -inf }
 0x140   : > { %v2212_v5 = vmax.f32 %v2210_v2, %v3578_v53  ;;  %v3024_v43 = vpack.c.bf16 %v2206_v55, %v2206_v55  ;;  %v927_v7 = vcombine.high %v925_v62, %v925_v62  ;;  %v1772_v12 = vrot.slane %v1771_v3, 4 }
 0x141   : > { %v2213_v25 = vsel %vm2191_vm4, %v1350_v44, -inf  ;;  %v3025_v63 = vpack.c.bf16 %v2209_v1, %v2209_v1  ;;  %v1778_v14 = vsel %vm1294_vm3, %v926_v18, -inf  ;;  %v1785_v6 = vsel %vm1294_vm3, %v925_v62, -inf }
 0x142   : > { %v2215_v32 = vmax.f32 %v2213_v25, %v3585_v36  ;;  %v3026_v13 = vpack.c.bf16 %v2212_v5, %v2212_v5  ;;  %v2644_v16 = vunpack.c.l.b16 %v3024_v43  ;;  %v1773_v20 = vmax.f32 %v1771_v3, %v1772_v12 }
 0x143   : > { %v2645_v21 = vunpack.c.l.b16 %v3025_v63  ;;  %v1779_v53 = vrot.slane %v1778_v14, 4  ;;  %v1786_v22 = vrot.slane %v1785_v6, 4  ;;  %v1792_v23 = vsel %vm1294_vm3, %v927_v7, -inf }
 0x144   : > { %v3027_v52 = vpack.c.bf16 %v2215_v32, %v2215_v32  ;;  %v2646_v28 = vunpack.c.l.b16 %v3026_v13  ;;  %v2711_v49 = vsel %vm2710_vm8, %v2644_v16, %v3565_v59  ;;  %v1774_v31 = vrot.slane %v1773_v20, 2 }
 0x145   : > { %v2713_v34 = vsel %vm2712_vm9, %v2645_v21, %v2711_v49  ;;  %v1780_v35 = vmax.f32 %v1778_v14, %v1779_v53  ;;  %v1787_v36 = vmax.f32 %v1785_v6, %v1786_v22  ;;  %v1793_v37 = vrot.slane %v1792_v23, 4 }
 0x146   : > { %v2647_v39 = vunpack.c.l.b16 %v3027_v52  ;;  %v2715_v41 = vsel %vm2714_vm10, %v2646_v28, %v2713_v34  ;;  %v1775_v47 = vmax.f32 %v1773_v20, %v1774_v31  ;;  %v724_v45 = vcombine.high %v564_v40, %v564_v40 }
 0x147   : > { %v1781_v50 = vrot.slane %v1780_v35, 2  ;;  %v1788_v30 = vrot.slane %v1787_v36, 2  ;;  %v1794_v51 = vmax.f32 %v1792_v23, %v1793_v37  ;;  %v731_v56 = vrot.slane %v564_v40, %v3424_v29 }
 0x148   : > { %v2717_v59 = vsel %vm2716_vm11, %v2647_v39, %v2715_v41  ;;  %v1776_v58 = vrot.slane %v1775_v47, 1  ;;  %v738_v48 = vrot.slane %v724_v45, %v3424_v29  ;;  %v3642_v11 = vmax.f32 %v520_v60, 0.0  ;;  %v3661_v41 = vpop.f32.mrb[10].mxu1 }
 0x149   : > { %v2767_v55 = vpack.c.b16 %v2717_v59, %v2717_v59  ;;  %v1782_v8 = vmax.f32 %v1780_v35, %v1781_v50  ;;  %v1789_v62 = vmax.f32 %v1787_v36, %v1788_v30  ;;  %v1795_v18 = vrot.slane %v1794_v51, 2 }
 0x14a   : > { %v1777_v44 = vmax.f32 %v1775_v47, %v1776_v58  ;;  %v739_v1 = vcombine.high %v731_v56, %v731_v56  ;;  %v740_v2 = vcombine.high %v738_v48, %v738_v48  ;;  %v1463_v3 = vsel %vm1294_vm3, %v731_v56, -inf }
 0x14b   : > { %2784 = vst.msk [vmem:[%s3647_s10] sm:$0xf] %vm2783_vm12, %v2767_v55  ;;  %v1783_v40 = vrot.slane %v1782_v8, 1  ;;  %v1790_v5 = vrot.slane %v1789_v62, 1  ;;  %v1796_v60 = vmax.f32 %v1794_v51, %v1795_v18  ;;  %v1464_v43 = vrot.slane %v1463_v3, 4 }
 0x14c   : > { %v2300_v7 = vsel %vm2191_vm4, %v1777_v44, -inf  ;;  %v1470_v12 = vsel %vm1294_vm3, %v739_v1, -inf  ;;  %v1477_v25 = vsel %vm1294_vm3, %v738_v48, -inf  ;;  %v1484_v63 = vsel %vm1294_vm3, %v740_v2, -inf }
 0x14d   : > { %v1784_v14 = vmax.f32 %v1782_v8, %v1783_v40  ;;  %v1791_v6 = vmax.f32 %v1789_v62, %v1790_v5  ;;  %v1797_v32 = vrot.slane %v1796_v60, 1  ;;  %v2302_v13 = vmax.f32 %v2300_v7, %v3594_v19 }
 0x14e   : > { %v1465_v16 = vmax.f32 %v1463_v3, %v1464_v43  ;;  %v1471_v20 = vrot.slane %v1470_v12, 4  ;;  %v1478_v21 = vrot.slane %v1477_v25, 4  ;;  %v1485_v53 = vrot.slane %v1484_v63, 4 }
 0x14f   : > { %v1798_v22 = vmax.f32 %v1796_v60, %v1797_v32  ;;  %v2303_v23 = vsel %vm2191_vm4, %v1784_v14, -inf  ;;  %v2306_v52 = vsel %vm2191_vm4, %v1791_v6, -inf  ;;  %v3056_v28 = vpack.c.bf16 %v2302_v13, %v2302_v13 }
 0x150   : > { %v2305_v49 = vmax.f32 %v2303_v23, %v3599_v42  ;;  %v2308_v31 = vmax.f32 %v2306_v52, %v3604_v33  ;;  %v1466_v34 = vrot.slane %v1465_v16, 2  ;;  %v1472_v35 = vmax.f32 %v1470_v12, %v1471_v20 }
 0x151   : > { %v2309_v36 = vsel %vm2191_vm4, %v1798_v22, -inf  ;;  %v2676_v37 = vunpack.c.l.b16 %v3056_v28  ;;  %v1479_v19 = vmax.f32 %v1477_v25, %v1478_v21  ;;  %v1486_v39 = vmax.f32 %v1484_v63, %v1485_v53 }
 0x152   : > { %v2311_v47 = vmax.f32 %v2309_v36, %v3607_v38  ;;  %v3057_v45 = vpack.c.bf16 %v2305_v49, %v2305_v49  ;;  %v3058_v50 = vpack.c.bf16 %v2308_v31, %v2308_v31  ;;  %v1467_v30 = vmax.f32 %v1465_v16, %v1466_v34 }
 0x153   : > { %v2742_v51 = vsel %vm2710_vm8, %v2676_v37, %v3612_v46  ;;  %v1473_v42 = vrot.slane %v1472_v35, 2  ;;  %v1480_v56 = vrot.slane %v1479_v19, 2  ;;  %v1487_v33 = vrot.slane %v1486_v39, 2 }
 0x154   : > { %v3059_v59 = vpack.c.bf16 %v2311_v47, %v2311_v47  ;;  %v2677_v58 = vunpack.c.l.b16 %v3057_v45  ;;  %v2678_v48 = vunpack.c.l.b16 %v3058_v50  ;;  %v1468_v55 = vrot.slane %v1467_v30, 1 }
 0x155   : > { %v1474_v8 = vmax.f32 %v1472_v35, %v1473_v42  ;;  %v1481_v62 = vmax.f32 %v1479_v19, %v1480_v56  ;;  %v1488_v18 = vmax.f32 %v1486_v39, %v1487_v33  ;;  %v996_v44 = vcombine.high %v3642_v11, %v3642_v11 }
 0x156   : > { %v2679_v38 = vunpack.c.l.b16 %v3059_v59  ;;  %v2743_v1 = vsel %vm2712_vm9, %v2677_v58, %v2742_v51  ;;  %v1469_v2 = vmax.f32 %v1467_v30, %v1468_v55  ;;  %v1003_v46 = vrot.slane %v3642_v11, %v3424_v29  ;;  %v3705_v59 = vpop.f32.mrb[11].mxu0 }
 0x157   : > { %v2744_v3 = vsel %vm2714_vm10, %v2678_v48, %v2743_v1  ;;  %v1475_v40 = vrot.slane %v1474_v8, 1  ;;  %v1482_v5 = vrot.slane %v1481_v62, 1  ;;  %v1489_v60 = vrot.slane %v1488_v18, 1 }
 0x158   : > { %v2745_v43 = vsel %vm2716_vm11, %v2679_v38, %v2744_v3  ;;  %v3674_v7 = vsel %vm2191_vm4, %v1469_v2, -inf  ;;  %v1010_v12 = vrot.slane %v996_v44, %v3424_v29  ;;  %v1011_v25 = vcombine.high %v1003_v46, %v1003_v46 }
 0x159   : > { %v2771_v63 = vpack.c.b16 %v2745_v43, %v2745_v43  ;;  %v1476_v14 = vmax.f32 %v1474_v8, %v1475_v40  ;;  %v1483_v6 = vmax.f32 %v1481_v62, %v1482_v5  ;;  %v1490_v32 = vmax.f32 %v1488_v18, %v1489_v60 }
 0x15a   : > { %v1012_v13 = vcombine.high %v1010_v12, %v1010_v12  ;;  %v1911_v11 = vsel %vm1294_vm3, %v1003_v46, -inf  ;;  %v1918_v16 = vsel %vm1294_vm3, %v1011_v25, -inf  ;;  %v1925_v20 = vsel %vm1294_vm3, %v1010_v12, -inf }
 0x15b   : > { %2788 = vst.msk [vmem:[%s3647_s10 + $0x10] sm:$0xf] %vm2783_vm12, %v2771_v63  ;;  %v3683_v21 = vsel %vm2191_vm4, %v1476_v14, -inf  ;;  %v3686_v53 = vsel %vm2191_vm4, %v1483_v6, -inf  ;;  %v3689_v22 = vsel %vm2191_vm4, %v1490_v32, -inf  ;;  %v1912_v23 = vrot.slane %v1911_v11, 4 }
 0x15c   : > { %v1919_v52 = vrot.slane %v1918_v16, 4  ;;  %v1926_v28 = vrot.slane %v1925_v20, 4  ;;  %v1932_v49 = vsel %vm1294_vm3, %v1012_v13, -inf  ;;  %v448_v31 = vadd.f32 %v3421_v26, %v3464_v4 }
 0x15d   : > { %v1913_v34 = vmax.f32 %v1911_v11, %v1912_v23  ;;  %v1933_v35 = vrot.slane %v1932_v49, 4  ;;  %v512_v36 = vadd.f32 %v3421_v26, %v3466_v9  ;;  %v459_v37 = vadd.f32 %v3468_v10, %v3421_v26 }
 0x15e   : > { %v1920_v19 = vmax.f32 %v1918_v16, %v1919_v52  ;;  %v1927_v39 = vmax.f32 %v1925_v20, %v1926_v28  ;;  %v562_v47 = vmax.f32 %v448_v31, 0.0  ;;  %v3700_v45 = vadd.f32 %v3473_v15, %v3421_v26 }
 0x15f   : > { %v1914_v50 = vrot.slane %v1913_v34, 2  ;;  %v1934_v30 = vmax.f32 %v1932_v49, %v1933_v35  ;;  %v578_v51 = vmax.f32 %v512_v36, 0.0  ;;  %v3702_v42 = vmax.f32 %v459_v37, 0.0  ;;  %v3723_v49 = vpop.f32.mrb[11].mxu1 }
 0x160   : > { %v1921_v4 = vrot.slane %v1920_v19, 2  ;;  %v1928_v56 = vrot.slane %v1927_v39, 2  ;;  %v690_v33 = vcombine.high %v562_v47, %v562_v47  ;;  %v697_v9 = vrot.slane %v562_v47, %v3424_v29 }
 0x161   : > { %v1915_v10 = vmax.f32 %v1913_v34, %v1914_v50  ;;  %v1935_v58 = vrot.slane %v1934_v30, 2  ;;  %v962_v48 = vcombine.high %v578_v51, %v578_v51  ;;  %v969_v55 = vrot.slane %v578_v51, %v3424_v29 }
 0x162   : > { %v1922_v8 = vmax.f32 %v1920_v19, %v1921_v4  ;;  %v1929_v26 = vmax.f32 %v1927_v39, %v1928_v56  ;;  %v704_v15 = vrot.slane %v690_v33, %v3424_v29  ;;  %v705_v62 = vcombine.high %v697_v9, %v697_v9 }
 0x163   : > { %v1916_v18 = vrot.slane %v1915_v10, 1  ;;  %v1936_v44 = vmax.f32 %v1934_v30, %v1935_v58  ;;  %v1407_v38 = vsel %vm1294_vm3, %v697_v9, -inf  ;;  %v976_v1 = vrot.slane %v962_v48, %v3424_v29 }
 0x164   : > { %v1923_v2 = vrot.slane %v1922_v8, 1  ;;  %v1930_v46 = vrot.slane %v1929_v26, 1  ;;  %v706_v3 = vcombine.high %v704_v15, %v704_v15  ;;  %v1408_v40 = vrot.slane %v1407_v38, 4 }
 0x165   : > { %v1917_v5 = vmax.f32 %v1915_v10, %v1916_v18  ;;  %v1937_v60 = vrot.slane %v1936_v44, 1  ;;  %v1414_v43 = vsel %vm1294_vm3, %v705_v62, -inf  ;;  %v1421_v12 = vsel %vm1294_vm3, %v704_v15, -inf }
 0x166   : > { %v1924_v25 = vmax.f32 %v1922_v8, %v1923_v2  ;;  %v1931_v63 = vmax.f32 %v1929_v26, %v1930_v46  ;;  %v1409_v14 = vmax.f32 %v1407_v38, %v1408_v40  ;;  %v1415_v6 = vrot.slane %v1414_v43, 4 }
 0x167   : > { %v1938_v32 = vmax.f32 %v1936_v44, %v1937_v60  ;;  %v3714_v13 = vsel %vm2191_vm4, %v1917_v5, -inf  ;;  %v1422_v11 = vrot.slane %v1421_v12, 4  ;;  %v1428_v16 = vsel %vm1294_vm3, %v706_v3, -inf }
 0x168   : > { %v3718_v20 = vsel %vm2191_vm4, %v1924_v25, -inf  ;;  %v3721_v23 = vsel %vm2191_vm4, %v1931_v63, -inf  ;;  %v1410_v52 = vrot.slane %v1409_v14, 2  ;;  %v1416_v28 = vmax.f32 %v1414_v43, %v1415_v6 }
 0x169   : > { %v3726_v31 = vsel %vm2191_vm4, %v1938_v32, -inf  ;;  %v1423_v34 = vmax.f32 %v1421_v12, %v1422_v11  ;;  %v1429_v35 = vrot.slane %v1428_v16, 4  ;;  %v977_v36 = vcombine.high %v969_v55, %v969_v55 }
 0x16a   : > { %v1411_v37 = vmax.f32 %v1409_v14, %v1410_v52  ;;  %v1417_v19 = vrot.slane %v1416_v28, 2  ;;  %v978_v39 = vcombine.high %v976_v1, %v976_v1  ;;  %v1855_v47 = vsel %vm1294_vm3, %v969_v55, -inf }
 0x16b   : > { %v1424_v50 = vrot.slane %v1423_v34, 2  ;;  %v1430_v30 = vmax.f32 %v1428_v16, %v1429_v35  ;;  %v1856_v51 = vrot.slane %v1855_v47, 4  ;;  %v1862_v4 = vsel %vm1294_vm3, %v977_v36, -inf }
 0x16c   : > { %v1412_v56 = vrot.slane %v1411_v37, 1  ;;  %v1418_v33 = vmax.f32 %v1416_v28, %v1417_v19  ;;  %v1863_v9 = vrot.slane %v1862_v4, 4  ;;  %v1869_v10 = vsel %vm1294_vm3, %v976_v1, -inf }
 0x16d   : > { %v1425_v58 = vmax.f32 %v1423_v34, %v1424_v50  ;;  %v1431_v48 = vrot.slane %v1430_v30, 2  ;;  %v1857_v8 = vmax.f32 %v1855_v47, %v1856_v51  ;;  %v1870_v26 = vrot.slane %v1869_v10, 4 }
 0x16e   : > { %v1413_v15 = vmax.f32 %v1411_v37, %v1412_v56  ;;  %v1419_v62 = vrot.slane %v1418_v33, 1  ;;  %v1864_v18 = vmax.f32 %v1862_v4, %v1863_v9  ;;  %v1876_v44 = vsel %vm1294_vm3, %v978_v39, -inf }
 0x16f   : > { %v1426_v55 = vrot.slane %v1425_v58, 1  ;;  %v1432_v38 = vmax.f32 %v1430_v30, %v1431_v48  ;;  %v1858_v2 = vrot.slane %v1857_v8, 2  ;;  %v1871_v46 = vmax.f32 %v1869_v10, %v1870_v26 }
 0x170   : > { %v1420_v3 = vmax.f32 %v1418_v33, %v1419_v62  ;;  %v2216_v40 = vsel %vm2191_vm4, %v1413_v15, -inf  ;;  %v1865_v5 = vrot.slane %v1864_v18, 2  ;;  %v1877_v60 = vrot.slane %v1876_v44, 4 }
 0x171   : > { %v1427_v43 = vmax.f32 %v1425_v58, %v1426_v55  ;;  %v1433_v1 = vrot.slane %v1432_v38, 1  ;;  %v2218_v12 = vmax.f32 %v2216_v40, %v3674_v7  ;;  %v1859_v25 = vmax.f32 %v1857_v8, %v1858_v2 }
 0x172   : > { %v2219_v63 = vsel %vm2191_vm4, %v1420_v3, -inf  ;;  %v1866_v14 = vmax.f32 %v1864_v18, %v1865_v5  ;;  %v1872_v6 = vrot.slane %v1871_v46, 2  ;;  %v1878_v32 = vmax.f32 %v1876_v44, %v1877_v60 }
 0x173   : > { %v1434_v11 = vmax.f32 %v1432_v38, %v1433_v1  ;;  %v2221_v16 = vmax.f32 %v2219_v63, %v3683_v21  ;;  %v2222_v52 = vsel %vm2191_vm4, %v1427_v43, -inf  ;;  %v3028_v28 = vpack.c.bf16 %v2218_v12, %v2218_v12 }
 0x174   : > { %v2224_v34 = vmax.f32 %v2222_v52, %v3686_v53  ;;  %v1860_v35 = vrot.slane %v1859_v25, 1  ;;  %v1867_v36 = vrot.slane %v1866_v14, 1  ;;  %v1873_v37 = vmax.f32 %v1871_v46, %v1872_v6  ;;  %v3742_v53 = vpop.f32.mrb[12].mxu0 }
 0x175   : > { %v2225_v19 = vsel %vm2191_vm4, %v1434_v11, -inf  ;;  %v3029_v7 = vpack.c.bf16 %v2221_v16, %v2221_v16  ;;  %v2648_v39 = vunpack.c.l.b16 %v3028_v28  ;;  %v1879_v47 = vrot.slane %v1878_v32, 2 }
 0x176   : > { %v2227_v50 = vmax.f32 %v2225_v19, %v3689_v22  ;;  %v3030_v30 = vpack.c.bf16 %v2224_v34, %v2224_v34  ;;  %v1861_v51 = vmax.f32 %v1859_v25, %v1860_v35  ;;  %v1868_v4 = vmax.f32 %v1866_v14, %v1867_v36 }
 0x177   : > { %v2649_v56 = vunpack.c.l.b16 %v3029_v7  ;;  %v1874_v21 = vrot.slane %v1873_v37, 1  ;;  %v1880_v33 = vmax.f32 %v1878_v32, %v1879_v47  ;;  %v741_v9 = vcombine.high %v3702_v42, %v3702_v42 }
 0x178   : > { %v3031_v10 = vpack.c.bf16 %v2227_v50, %v2227_v50  ;;  %v2650_v58 = vunpack.c.l.b16 %v3030_v30  ;;  %v2312_v48 = vsel %vm2191_vm4, %v1861_v51, -inf  ;;  %v2315_v8 = vsel %vm2191_vm4, %v1868_v4, -inf  ;;  %v3771_v50 = vld [vmem:[%s4302_s2] ss:$0 sm:$0xff] }
 0x179   : > { %v2718_v26 = vsel %vm2704_vm5, %v2649_v56, %v2648_v39  ;;  %v1875_v22 = vmax.f32 %v1873_v37, %v1874_v21  ;;  %v1881_v15 = vrot.slane %v1880_v33, 1  ;;  %v2314_v62 = vmax.f32 %v2312_v48, %v3714_v13 }
 0x17a   : > { %v2651_v18 = vunpack.c.l.b16 %v3031_v10  ;;  %v2719_v44 = vsel %vm2706_vm6, %v2650_v58, %v2718_v26  ;;  %v2317_v55 = vmax.f32 %v2315_v8, %v3718_v20  ;;  %v748_v38 = vrot.slane %v3702_v42, %v3424_v29  ;;  %v3779_v58 = vpop.f32.mrb[12].mxu1 }
 0x17b   : > { %v1882_v2 = vmax.f32 %v1880_v33, %v1881_v15  ;;  %v2318_v46 = vsel %vm2191_vm4, %v1875_v22, -inf  ;;  %v3060_v3 = vpack.c.bf16 %v2314_v62, %v2314_v62  ;;  %v755_v40 = vrot.slane %v741_v9, %v3424_v29 }
 0x17c   : > { %v2320_v5 = vmax.f32 %v2318_v46, %v3721_v23  ;;  %v3061_v60 = vpack.c.bf16 %v2317_v55, %v2317_v55  ;;  %v756_v43 = vcombine.high %v748_v38, %v748_v38  ;;  %v1491_v13 = vsel %vm1294_vm3, %v748_v38, -inf }
 0x17d   : > { %v2321_v1 = vsel %vm2191_vm4, %v1882_v2, -inf  ;;  %v2680_v12 = vunpack.c.l.b16 %v3060_v3  ;;  %v757_v25 = vcombine.high %v755_v40, %v755_v40  ;;  %v1492_v20 = vrot.slane %v1491_v13, 4 }
 0x17e   : > { %v2323_v63 = vmax.f32 %v2321_v1, %v3726_v31  ;;  %v3062_v42 = vpack.c.bf16 %v2320_v5, %v2320_v5  ;;  %v2681_v14 = vunpack.c.l.b16 %v3061_v60  ;;  %v1498_v6 = vsel %vm1294_vm3, %v756_v43, -inf }
 0x17f   : > { %v1493_v32 = vmax.f32 %v1491_v13, %v1492_v20  ;;  %v1499_v11 = vrot.slane %v1498_v6, 4  ;;  %v1505_v16 = vsel %vm1294_vm3, %v755_v40, -inf  ;;  %v1512_v23 = vsel %vm1294_vm3, %v757_v25, -inf }
 0x180   : > { %v3063_v52 = vpack.c.bf16 %v2323_v63, %v2323_v63  ;;  %v2682_v28 = vunpack.c.l.b16 %v3062_v42  ;;  %v2746_v34 = vsel %vm2704_vm5, %v2681_v14, %v2680_v12  ;;  %v1506_v35 = vrot.slane %v1505_v16, 4 }
 0x181   : > { %v1494_v36 = vrot.slane %v1493_v32, 2  ;;  %v1500_v37 = vmax.f32 %v1498_v6, %v1499_v11  ;;  %v1513_v19 = vrot.slane %v1512_v23, 4  ;;  %v581_v31 = vmax.f32 %v3700_v45, 0.0 }
 0x182   : > { %v3763_v7 = vunpack.c.l.b16 %v3063_v52  ;;  %v3766_v39 = vsel %vm2706_vm6, %v2682_v28, %v2746_v34  ;;  %v1507_v47 = vmax.f32 %v1505_v16, %v1506_v35  ;;  %v451_v30 = vadd.f32 %v3771_v50, %v3476_v54 }
 0x183   : > { %v1495_v51 = vmax.f32 %v1493_v32, %v1494_v36  ;;  %v1501_v4 = vrot.slane %v1500_v37, 2  ;;  %v1514_v56 = vmax.f32 %v1512_v23, %v1513_v19  ;;  %v1013_v21 = vcombine.high %v581_v31, %v581_v31 }
 0x184   : > { %v1508_v33 = vrot.slane %v1507_v47, 2  ;;  %v1020_v45 = vrot.slane %v581_v31, %v3424_v29  ;;  %v563_v9 = vmax.f32 %v451_v30, 0.0  ;;  %v3777_v10 = vsel %vm2708_vm7, %v2651_v18, %v2719_v44 }
 0x185   : > { %v1496_v48 = vrot.slane %v1495_v51, 1  ;;  %v1502_v8 = vmax.f32 %v1500_v37, %v1501_v4  ;;  %v1515_v26 = vrot.slane %v1514_v56, 2  ;;  %v1027_v22 = vrot.slane %v1013_v21, %v3424_v29 }
 0x186   : > { %v1509_v15 = vmax.f32 %v1507_v47, %v1508_v33  ;;  %v1028_v54 = vcombine.high %v1020_v45, %v1020_v45  ;;  %v1939_v62 = vsel %vm1294_vm3, %v1020_v45, -inf  ;;  %v707_v55 = vcombine.high %v563_v9, %v563_v9 }
 0x187   : > { %v1497_v38 = vmax.f32 %v1495_v51, %v1496_v48  ;;  %v1503_v2 = vrot.slane %v1502_v8, 1  ;;  %v1516_v46 = vmax.f32 %v1514_v56, %v1515_v26  ;;  %v1029_v3 = vcombine.high %v1027_v22, %v1027_v22  ;;  %v3803_v48 = vpop.f32.mrb[13].mxu0 }
 0x188   : > { %v1510_v40 = vrot.slane %v1509_v15, 1  ;;  %v1940_v5 = vrot.slane %v1939_v62, 4  ;;  %v1946_v18 = vsel %vm1294_vm3, %v1028_v54, -inf  ;;  %v1953_v44 = vsel %vm1294_vm3, %v1027_v22, -inf }
 0x189   : > { %v1504_v60 = vmax.f32 %v1502_v8, %v1503_v2  ;;  %v1517_v43 = vrot.slane %v1516_v46, 1  ;;  %v3786_v13 = vsel %vm2191_vm4, %v1497_v38, -inf  ;;  %v1947_v1 = vrot.slane %v1946_v18, 4 }
 0x18a   : > { %v1511_v12 = vmax.f32 %v1509_v15, %v1510_v40  ;;  %v1941_v25 = vmax.f32 %v1939_v62, %v1940_v5  ;;  %v1954_v20 = vrot.slane %v1953_v44, 4  ;;  %v1960_v63 = vsel %vm1294_vm3, %v1029_v3, -inf }
 0x18b   : > { %v1518_v42 = vmax.f32 %v1516_v46, %v1517_v43  ;;  %v3790_v14 = vsel %vm2191_vm4, %v1504_v60, -inf  ;;  %v1948_v6 = vmax.f32 %v1946_v18, %v1947_v1  ;;  %v1961_v32 = vrot.slane %v1960_v63, 4 }
 0x18c   : > { %v3793_v11 = vsel %vm2191_vm4, %v1511_v12, -inf  ;;  %v1942_v16 = vrot.slane %v1941_v25, 2  ;;  %v1955_v23 = vmax.f32 %v1953_v44, %v1954_v20  ;;  %v714_v52 = vrot.slane %v563_v9, %v3424_v29  ;;  %v3812_v20 = vpop.f32.mrb[13].mxu1 }
 0x18d   : > { %v3797_v28 = vsel %vm2191_vm4, %v1518_v42, -inf  ;;  %v1949_v34 = vrot.slane %v1948_v6, 2  ;;  %v1962_v35 = vmax.f32 %v1960_v63, %v1961_v32  ;;  %v721_v36 = vrot.slane %v707_v55, %v3424_v29 }
 0x18e   : > { %v1943_v37 = vmax.f32 %v1941_v25, %v1942_v16  ;;  %v1956_v19 = vrot.slane %v1955_v23, 2  ;;  %v722_v31 = vcombine.high %v714_v52, %v714_v52  ;;  %v1435_v47 = vsel %vm1294_vm3, %v714_v52, -inf }
 0x18f   : > { %v1950_v30 = vmax.f32 %v1948_v6, %v1949_v34  ;;  %v1963_v51 = vrot.slane %v1962_v35, 2  ;;  %v723_v4 = vcombine.high %v721_v36, %v721_v36  ;;  %v1436_v56 = vrot.slane %v1435_v47, 4 }
 0x190   : > { %v1944_v21 = vrot.slane %v1943_v37, 1  ;;  %v1957_v33 = vmax.f32 %v1955_v23, %v1956_v19  ;;  %v1442_v45 = vsel %vm1294_vm3, %v722_v31, -inf  ;;  %v1449_v9 = vsel %vm1294_vm3, %v721_v36, -inf }
 0x191   : > { %v1951_v8 = vrot.slane %v1950_v30, 1  ;;  %v1964_v26 = vmax.f32 %v1962_v35, %v1963_v51  ;;  %v1437_v22 = vmax.f32 %v1435_v47, %v1436_v56  ;;  %v1443_v15 = vrot.slane %v1442_v45, 4 }
 0x192   : > { %v1945_v54 = vmax.f32 %v1943_v37, %v1944_v21  ;;  %v1958_v62 = vrot.slane %v1957_v33, 1  ;;  %v1450_v55 = vrot.slane %v1449_v9, 4  ;;  %v1456_v38 = vsel %vm1294_vm3, %v723_v4, -inf }
 0x193   : > { %v1952_v2 = vmax.f32 %v1950_v30, %v1951_v8  ;;  %v1965_v46 = vrot.slane %v1964_v26, 1  ;;  %v1438_v3 = vrot.slane %v1437_v22, 2  ;;  %v1444_v40 = vmax.f32 %v1442_v45, %v1443_v15 }
 0x194   : > { %v1959_v5 = vmax.f32 %v1957_v33, %v1958_v62  ;;  %v3807_v18 = vsel %vm2191_vm4, %v1945_v54, -inf  ;;  %v1451_v44 = vmax.f32 %v1449_v9, %v1450_v55  ;;  %v1457_v60 = vrot.slane %v1456_v38, 4 }
 0x195   : > { %v1966_v43 = vmax.f32 %v1964_v26, %v1965_v46  ;;  %v3810_v1 = vsel %vm2191_vm4, %v1952_v2, -inf  ;;  %v1439_v12 = vmax.f32 %v1437_v22, %v1438_v3  ;;  %v1445_v25 = vrot.slane %v1444_v40, 2 }
 0x196   : > { %v3815_v63 = vsel %vm2191_vm4, %v1959_v5, -inf  ;;  %v1452_v42 = vrot.slane %v1451_v44, 2  ;;  %v1458_v6 = vmax.f32 %v1456_v38, %v1457_v60  ;;  %v515_v32 = vadd.f32 %v3771_v50, %v3508_v24 }
 0x197   : > { %v3820_v16 = vsel %vm2191_vm4, %v1966_v43, -inf  ;;  %v1440_v23 = vrot.slane %v1439_v12, 1  ;;  %v1446_v52 = vmax.f32 %v1444_v40, %v1445_v25  ;;  %v3825_v34 = vsel %vm2708_vm7, %v3763_v7, %v3766_v39 }
 0x198   : > { %v1453_v35 = vmax.f32 %v1451_v44, %v1452_v42  ;;  %v1459_v36 = vrot.slane %v1458_v6, 2  ;;  %v579_v37 = vmax.f32 %v515_v32, 0.0  ;;  %v472_v19 = vadd.f32 %v3771_v50, %v3545_v17 }
 0x199   : > { %v1441_v31 = vmax.f32 %v1439_v12, %v1440_v23  ;;  %v1447_v47 = vrot.slane %v1446_v52, 1  ;;  %v536_v24 = vadd.f32 %v3771_v50, %v3560_v0  ;;  %v3833_v30 = vadd.f32 %v3771_v50, %v3590_v61 }
 0x19a   : > { %v1454_v51 = vrot.slane %v1453_v35, 1  ;;  %v1460_v4 = vmax.f32 %v1458_v6, %v1459_v36  ;;  %v979_v56 = vcombine.high %v579_v37, %v579_v37  ;;  %v986_v7 = vrot.slane %v579_v37, %v3424_v29 }
 0x19b   : > { %v1448_v39 = vmax.f32 %v1446_v52, %v1447_v47  ;;  %v2228_v21 = vsel %vm2191_vm4, %v1441_v31, -inf  ;;  %v568_v33 = vmax.f32 %v472_v19, 0.0  ;;  %v3837_v45 = vmax.f32 %v536_v24, 0.0 }
 0x19c   : > { %v1455_v17 = vmax.f32 %v1453_v35, %v1454_v51  ;;  %v1461_v9 = vrot.slane %v1460_v4, 1  ;;  %v2230_v8 = vmax.f32 %v2228_v21, %v3786_v13  ;;  %v993_v0 = vrot.slane %v979_v56, %v3424_v29  ;;  %v3856_v56 = vpop.f32.mrb[14].mxu0 }
 0x19d   : > { %v2231_v61 = vsel %vm2191_vm4, %v1448_v39, -inf  ;;  %v994_v26 = vcombine.high %v986_v7, %v986_v7  ;;  %v1883_v22 = vsel %vm1294_vm3, %v986_v7, -inf  ;;  %v792_v15 = vcombine.high %v568_v33, %v568_v33 }
 0x19e   : > { %v1462_v54 = vmax.f32 %v1460_v4, %v1461_v9  ;;  %v2233_v62 = vmax.f32 %v2231_v61, %v3790_v14  ;;  %v2234_v55 = vsel %vm2191_vm4, %v1455_v17, -inf  ;;  %v3032_v38 = vpack.c.bf16 %v2230_v8, %v2230_v8 }
 0x19f   : > { %v2236_v2 = vmax.f32 %v2234_v55, %v3793_v11  ;;  %v995_v46 = vcombine.high %v993_v0, %v993_v0  ;;  %v1884_v3 = vrot.slane %v1883_v22, 4  ;;  %v1890_v13 = vsel %vm1294_vm3, %v994_v26, -inf }
 0x1a0   : > { %v2237_v40 = vsel %vm2191_vm4, %v1462_v54, -inf  ;;  %v3033_v5 = vpack.c.bf16 %v2233_v62, %v2233_v62  ;;  %v2652_v44 = vunpack.c.l.b16 %v3032_v38  ;;  %v1891_v60 = vrot.slane %v1890_v13, 4 }
 0x1a1   : > { %v2239_v43 = vmax.f32 %v2237_v40, %v3797_v28  ;;  %v3034_v12 = vpack.c.bf16 %v2236_v2, %v2236_v2  ;;  %v1885_v25 = vmax.f32 %v1883_v22, %v1884_v3  ;;  %v1897_v14 = vsel %vm1294_vm3, %v993_v0, -inf }
 0x1a2   : > { %v2653_v42 = vunpack.c.l.b16 %v3033_v5  ;;  %v2721_v6 = vsel %vm2710_vm8, %v2652_v44, %v3777_v10  ;;  %v1892_v11 = vmax.f32 %v1890_v13, %v1891_v60  ;;  %v1898_v32 = vrot.slane %v1897_v14, 4 }
 0x1a3   : > { %v3035_v23 = vpack.c.bf16 %v2239_v43, %v2239_v43  ;;  %v2654_v52 = vunpack.c.l.b16 %v3034_v12  ;;  %v1886_v35 = vrot.slane %v1885_v25, 2  ;;  %v1904_v36 = vsel %vm1294_vm3, %v995_v46, -inf }
 0x1a4   : > { %v2722_v37 = vsel %vm2712_vm9, %v2653_v42, %v2721_v6  ;;  %v1893_v19 = vrot.slane %v1892_v11, 2  ;;  %v1899_v31 = vmax.f32 %v1897_v14, %v1898_v32  ;;  %v1905_v28 = vrot.slane %v1904_v36, 4 }
 0x1a5   : > { %v2655_v47 = vunpack.c.l.b16 %v3035_v23  ;;  %v2723_v24 = vsel %vm2714_vm10, %v2654_v52, %v2722_v37  ;;  %v1887_v51 = vmax.f32 %v1885_v25, %v1886_v35  ;;  %v799_v4 = vrot.slane %v568_v33, %v3424_v29 }
 0x1a6   : > { %v1894_v10 = vmax.f32 %v1892_v11, %v1893_v19  ;;  %v1900_v7 = vrot.slane %v1899_v31, 2  ;;  %v1906_v39 = vmax.f32 %v1904_v36, %v1905_v28  ;;  %v806_v21 = vrot.slane %v792_v15, %v3424_v29 }
 0x1a7   : > { %v2724_v17 = vsel %vm2716_vm11, %v2655_v47, %v2723_v24  ;;  %v1888_v9 = vrot.slane %v1887_v51, 1  ;;  %v807_v8 = vcombine.high %v799_v4, %v799_v4  ;;  %v1575_v0 = vsel %vm1294_vm3, %v799_v4, -inf }
 0x1a8   : > { %v2768_v61 = vpack.c.b16 %v2724_v17, %v2724_v17  ;;  %v1895_v26 = vrot.slane %v1894_v10, 1  ;;  %v1901_v22 = vmax.f32 %v1899_v31, %v1900_v7  ;;  %v1907_v54 = vrot.slane %v1906_v39, 2 }
 0x1a9   : > { %v1889_v62 = vmax.f32 %v1887_v51, %v1888_v9  ;;  %v808_v33 = vcombine.high %v806_v21, %v806_v21  ;;  %v1576_v55 = vrot.slane %v1575_v0, 4  ;;  %v1582_v38 = vsel %vm1294_vm3, %v807_v8, -inf }
 0x1aa   : > { %2785 = vst.msk [vmem:[%s3647_s10 + $0x4] sm:$0xf] %vm2783_vm12, %v2768_v61  ;;  %v1896_v2 = vmax.f32 %v1894_v10, %v1895_v26  ;;  %v1902_v46 = vrot.slane %v1901_v22, 1  ;;  %v1908_v15 = vmax.f32 %v1906_v39, %v1907_v54  ;;  %v1583_v3 = vrot.slane %v1582_v38, 4 }
 0x1ab   : > { %v2324_v13 = vsel %vm2191_vm4, %v1889_v62, -inf  ;;  %v1577_v40 = vmax.f32 %v1575_v0, %v1576_v55  ;;  %v1589_v5 = vsel %vm1294_vm3, %v806_v21, -inf  ;;  %v1596_v44 = vsel %vm1294_vm3, %v808_v33, -inf }
 0x1ac   : > { %v1903_v60 = vmax.f32 %v1901_v22, %v1902_v46  ;;  %v1909_v43 = vrot.slane %v1908_v15, 1  ;;  %v2326_v12 = vmax.f32 %v2324_v13, %v3807_v18  ;;  %v2327_v25 = vsel %vm2191_vm4, %v1896_v2, -inf }
 0x1ad   : > { %v2329_v14 = vmax.f32 %v2327_v25, %v3810_v1  ;;  %v1578_v42 = vrot.slane %v1577_v40, 2  ;;  %v1584_v6 = vmax.f32 %v1582_v38, %v1583_v3  ;;  %v1590_v11 = vrot.slane %v1589_v5, 4 }
 0x1ae   : > { %v1910_v32 = vmax.f32 %v1908_v15, %v1909_v43  ;;  %v2330_v23 = vsel %vm2191_vm4, %v1903_v60, -inf  ;;  %v3064_v52 = vpack.c.bf16 %v2326_v12, %v2326_v12  ;;  %v1597_v35 = vrot.slane %v1596_v44, 4 }
 0x1af   : > { %v2332_v36 = vmax.f32 %v2330_v23, %v3815_v63  ;;  %v3065_v37 = vpack.c.bf16 %v2329_v14, %v2329_v14  ;;  %v1579_v19 = vmax.f32 %v1577_v40, %v1578_v42  ;;  %v1585_v31 = vrot.slane %v1584_v6, 2  ;;  %v3876_v63 = vpop.f32.mrb[14].mxu1 }
 0x1b0   : > { %v2333_v28 = vsel %vm2191_vm4, %v1910_v32, -inf  ;;  %v2684_v18 = vunpack.c.l.b16 %v3064_v52  ;;  %v1591_v47 = vmax.f32 %v1589_v5, %v1590_v11  ;;  %v1598_v24 = vmax.f32 %v1596_v44, %v1597_v35 }
 0x1b1   : > { %v2335_v1 = vmax.f32 %v2333_v28, %v3820_v16  ;;  %v3066_v51 = vpack.c.bf16 %v2332_v36, %v2332_v36  ;;  %v2685_v4 = vunpack.c.l.b16 %v3065_v37  ;;  %v1580_v10 = vrot.slane %v1579_v19, 1 }
 0x1b2   : > { %v2749_v7 = vsel %vm2710_vm8, %v2684_v18, %v3825_v34  ;;  %v1586_v39 = vmax.f32 %v1584_v6, %v1585_v31  ;;  %v1592_v21 = vrot.slane %v1591_v47, 2  ;;  %v1599_v17 = vrot.slane %v1598_v24, 2  ;;  %v3908_v18 = vpop.f32.mrb[15].mxu0 }
 0x1b3   : > { %v3067_v9 = vpack.c.bf16 %v2335_v1, %v2335_v1  ;;  %v2686_v8 = vunpack.c.l.b16 %v3066_v51  ;;  %v2750_v0 = vsel %vm2712_vm9, %v2685_v4, %v2749_v7  ;;  %v1581_v61 = vmax.f32 %v1579_v19, %v1580_v10 }
 0x1b4   : > { %v1587_v26 = vrot.slane %v1586_v39, 1  ;;  %v1593_v22 = vmax.f32 %v1591_v47, %v1592_v21  ;;  %v1600_v54 = vmax.f32 %v1598_v24, %v1599_v17  ;;  %v1064_v16 = vcombine.high %v3837_v45, %v3837_v45 }
 0x1b5   : > { %v2687_v62 = vunpack.c.l.b16 %v3067_v9  ;;  %v2751_v33 = vsel %vm2714_vm10, %v2686_v8, %v2750_v0  ;;  %v3883_v34 = vsel %vm2191_vm4, %v1581_v61, -inf  ;;  %v1071_v55 = vrot.slane %v3837_v45, %v3424_v29 }
 0x1b6   : > { %v1588_v38 = vmax.f32 %v1586_v39, %v1587_v26  ;;  %v1594_v2 = vrot.slane %v1593_v22, 1  ;;  %v1601_v46 = vrot.slane %v1600_v54, 1  ;;  %v1078_v15 = vrot.slane %v1064_v16, %v3424_v29 }
 0x1b7   : > { %v2752_v3 = vsel %vm2716_vm11, %v2687_v62, %v2751_v33  ;;  %v1079_v13 = vcombine.high %v1071_v55, %v1071_v55  ;;  %v2023_v40 = vsel %vm1294_vm3, %v1071_v55, -inf  ;;  %v566_v5 = vmax.f32 %v3833_v30, 0.0 }
 0x1b8   : > { %v2772_v44 = vpack.c.b16 %v2752_v3, %v2752_v3  ;;  %v1595_v60 = vmax.f32 %v1593_v22, %v1594_v2  ;;  %v1602_v43 = vmax.f32 %v1600_v54, %v1601_v46  ;;  %v3892_v12 = vsel %vm2191_vm4, %v1588_v38, -inf }
 0x1b9   : > { %v1080_v45 = vcombine.high %v1078_v15, %v1078_v15  ;;  %v2024_v25 = vrot.slane %v2023_v40, 4  ;;  %v2030_v14 = vsel %vm1294_vm3, %v1079_v13, -inf  ;;  %v2037_v42 = vsel %vm1294_vm3, %v1078_v15, -inf }
 0x1ba   : > { %2789 = vst.msk [vmem:[%s3647_s10 + $0x14] sm:$0xf] %vm2783_vm12, %v2772_v44  ;;  %v3899_v6 = vsel %vm2191_vm4, %v1595_v60, -inf  ;;  %v3902_v11 = vsel %vm2191_vm4, %v1602_v43, -inf  ;;  %v2031_v30 = vrot.slane %v2030_v14, 4  ;;  %v2038_v32 = vrot.slane %v2037_v42, 4 }
 0x1bb   : > { %v2025_v23 = vmax.f32 %v2023_v40, %v2024_v25  ;;  %v2044_v52 = vsel %vm1294_vm3, %v1080_v45, -inf  ;;  %v758_v35 = vcombine.high %v566_v5, %v566_v5  ;;  %v765_v36 = vrot.slane %v566_v5, %v3424_v29 }
 0x1bc   : > { %v2032_v37 = vmax.f32 %v2030_v14, %v2031_v30  ;;  %v2039_v19 = vmax.f32 %v2037_v42, %v2038_v32  ;;  %v2045_v31 = vrot.slane %v2044_v52, 4  ;;  %v528_v28 = vadd.f32 %v3771_v50, %v3596_v27 }
 0x1bd   : > { %v2026_v47 = vrot.slane %v2025_v23, 2  ;;  %v772_v24 = vrot.slane %v758_v35, %v3424_v29  ;;  %v773_v1 = vcombine.high %v765_v36, %v765_v36  ;;  %v1519_v51 = vsel %vm1294_vm3, %v765_v36, -inf }
 0x1be   : > { %v2033_v4 = vrot.slane %v2032_v37, 2  ;;  %v2040_v10 = vrot.slane %v2039_v19, 2  ;;  %v2046_v7 = vmax.f32 %v2044_v52, %v2045_v31  ;;  %v1520_v39 = vrot.slane %v1519_v51, 4  ;;  %v3924_v52 = vpop.f32.mrb[15].mxu1 }
 0x1bf   : > { %v2027_v21 = vmax.f32 %v2025_v23, %v2026_v47  ;;  %v774_v17 = vcombine.high %v772_v24, %v772_v24  ;;  %v1526_v9 = vsel %vm1294_vm3, %v773_v1, -inf  ;;  %v1533_v8 = vsel %vm1294_vm3, %v772_v24, -inf }
 0x1c0   : > { %v2034_v0 = vmax.f32 %v2032_v37, %v2033_v4  ;;  %v2041_v27 = vmax.f32 %v2039_v19, %v2040_v10  ;;  %v2047_v61 = vrot.slane %v2046_v7, 2  ;;  %v1521_v26 = vmax.f32 %v1519_v51, %v1520_v39 }
 0x1c1   : > { %v2028_v22 = vrot.slane %v2027_v21, 1  ;;  %v1527_v54 = vrot.slane %v1526_v9, 4  ;;  %v1534_v16 = vrot.slane %v1533_v8, 4  ;;  %v1540_v62 = vsel %vm1294_vm3, %v774_v17, -inf }
 0x1c2   : > { %v2035_v33 = vrot.slane %v2034_v0, 1  ;;  %v2042_v55 = vrot.slane %v2041_v27, 1  ;;  %v2048_v38 = vmax.f32 %v2046_v7, %v2047_v61  ;;  %v1522_v2 = vrot.slane %v1521_v26, 2 }
 0x1c3   : > { %v2029_v46 = vmax.f32 %v2027_v21, %v2028_v22  ;;  %v1528_v15 = vmax.f32 %v1526_v9, %v1527_v54  ;;  %v1535_v3 = vmax.f32 %v1533_v8, %v1534_v16  ;;  %v1541_v13 = vrot.slane %v1540_v62, 4 }
 0x1c4   : > { %v2036_v40 = vmax.f32 %v2034_v0, %v2035_v33  ;;  %v2043_v5 = vmax.f32 %v2041_v27, %v2042_v55  ;;  %v2049_v44 = vrot.slane %v2048_v38, 1  ;;  %v1523_v60 = vmax.f32 %v1521_v26, %v1522_v2 }
 0x1c5   : > { %v3916_v43 = vsel %vm2191_vm4, %v2029_v46, -inf  ;;  %v1529_v45 = vrot.slane %v1528_v15, 2  ;;  %v1536_v25 = vrot.slane %v1535_v3, 2  ;;  %v1542_v14 = vmax.f32 %v1540_v62, %v1541_v13 }
 0x1c6   : > { %v2050_v42 = vmax.f32 %v2048_v38, %v2049_v44  ;;  %v3919_v30 = vsel %vm2191_vm4, %v2036_v40, -inf  ;;  %v3922_v32 = vsel %vm2191_vm4, %v2043_v5, -inf  ;;  %v1524_v23 = vrot.slane %v1523_v60, 1 }
 0x1c7   : > { %v1530_v35 = vmax.f32 %v1528_v15, %v1529_v45  ;;  %v1537_v36 = vmax.f32 %v1535_v3, %v1536_v25  ;;  %v1543_v37 = vrot.slane %v1542_v14, 2  ;;  %v582_v19 = vmax.f32 %v528_v28, 0.0 }
 0x1c8   : > { %v3927_v31 = vsel %vm2191_vm4, %v2050_v42, -inf  ;;  %v1525_v47 = vmax.f32 %v1523_v60, %v1524_v23  ;;  %v475_v24 = vadd.f32 %v3771_v50, %v3644_v57  ;;  %v539_v1 = vadd.f32 %v3771_v50, %v3661_v41 }
 0x1c9   : > { %v1531_v51 = vrot.slane %v1530_v35, 1  ;;  %v1538_v4 = vrot.slane %v1537_v36, 1  ;;  %v1544_v10 = vmax.f32 %v1542_v14, %v1543_v37  ;;  %v1030_v7 = vcombine.high %v582_v19, %v582_v19 }
 0x1ca   : > { %v2240_v39 = vsel %vm2191_vm4, %v1525_v47, -inf  ;;  %v1037_v21 = vrot.slane %v582_v19, %v3424_v29  ;;  %v569_v17 = vmax.f32 %v475_v24, 0.0  ;;  %v3935_v28 = vmax.f32 %v539_v1, 0.0 }
 0x1cb   : > { %v1532_v9 = vmax.f32 %v1530_v35, %v1531_v51  ;;  %v1539_v8 = vmax.f32 %v1537_v36, %v1538_v4  ;;  %v1545_v0 = vrot.slane %v1544_v10, 1  ;;  %v2242_v27 = vmax.f32 %v2240_v39, %v3883_v34 }
 0x1cc   : > { %v1044_v57 = vrot.slane %v1030_v7, %v3424_v29  ;;  %v1045_v61 = vcombine.high %v1037_v21, %v1037_v21  ;;  %v1967_v41 = vsel %vm1294_vm3, %v1037_v21, -inf  ;;  %v809_v26 = vcombine.high %v569_v17, %v569_v17 }
 0x1cd   : > { %v1546_v22 = vmax.f32 %v1544_v10, %v1545_v0  ;;  %v2243_v54 = vsel %vm2191_vm4, %v1532_v9, -inf  ;;  %v2246_v16 = vsel %vm2191_vm4, %v1539_v8, -inf  ;;  %v3036_v62 = vpack.c.bf16 %v2242_v27, %v2242_v27 }
 0x1ce   : > { %v2245_v33 = vmax.f32 %v2243_v54, %v3892_v12  ;;  %v2248_v55 = vmax.f32 %v2246_v16, %v3899_v6  ;;  %v1046_v38 = vcombine.high %v1044_v57, %v1044_v57  ;;  %v1968_v2 = vrot.slane %v1967_v41, 4 }
 0x1cf   : > { %v2249_v34 = vsel %vm2191_vm4, %v1546_v22, -inf  ;;  %v2656_v46 = vunpack.c.l.b16 %v3036_v62  ;;  %v1974_v15 = vsel %vm1294_vm3, %v1045_v61, -inf  ;;  %v1981_v3 = vsel %vm1294_vm3, %v1044_v57, -inf }
 0x1d0   : > { %v2251_v13 = vmax.f32 %v2249_v34, %v3902_v11  ;;  %v3037_v40 = vpack.c.bf16 %v2245_v33, %v2245_v33  ;;  %v3038_v5 = vpack.c.bf16 %v2248_v55, %v2248_v55  ;;  %v1969_v44 = vmax.f32 %v1967_v41, %v1968_v2 }
 0x1d1   : > { %v1975_v60 = vrot.slane %v1974_v15, 4  ;;  %v1982_v45 = vrot.slane %v1981_v3, 4  ;;  %v1988_v12 = vsel %vm1294_vm3, %v1046_v38, -inf  ;;  %v816_v6 = vrot.slane %v569_v17, %v3424_v29 }
 0x1d2   : > { %v3039_v25 = vpack.c.bf16 %v2251_v13, %v2251_v13  ;;  %v2657_v14 = vunpack.c.l.b16 %v3037_v40  ;;  %v2658_v42 = vunpack.c.l.b16 %v3038_v5  ;;  %v1970_v23 = vrot.slane %v1969_v44, 2 }
 0x1d3   : > { %v1976_v35 = vmax.f32 %v1974_v15, %v1975_v60  ;;  %v1983_v36 = vmax.f32 %v1981_v3, %v1982_v45  ;;  %v1989_v37 = vrot.slane %v1988_v12, 4  ;;  %v823_v19 = vrot.slane %v809_v26, %v3424_v29 }
 0x1d4   : > { %v3951_v47 = vunpack.c.l.b16 %v3039_v25  ;;  %v2725_v11 = vsel %vm2704_vm5, %v2657_v14, %v2656_v46  ;;  %v1971_v24 = vmax.f32 %v1969_v44, %v1970_v23  ;;  %v824_v1 = vcombine.high %v816_v6, %v816_v6 }
 0x1d5   : > { %v3955_v51 = vsel %vm2706_vm6, %v2658_v42, %v2725_v11  ;;  %v1977_v4 = vrot.slane %v1976_v35, 2  ;;  %v1984_v10 = vrot.slane %v1983_v36, 2  ;;  %v1990_v7 = vmax.f32 %v1988_v12, %v1989_v37 }
 0x1d6   : > { %v1972_v39 = vrot.slane %v1971_v24, 1  ;;  %v825_v21 = vcombine.high %v823_v19, %v823_v19  ;;  %v1603_v17 = vsel %vm1294_vm3, %v816_v6, -inf  ;;  %v1610_v9 = vsel %vm1294_vm3, %v824_v1, -inf }
 0x1d7   : > { %v1978_v8 = vmax.f32 %v1976_v35, %v1977_v4  ;;  %v1985_v0 = vmax.f32 %v1983_v36, %v1984_v10  ;;  %v1991_v27 = vrot.slane %v1990_v7, 2  ;;  %v1604_v57 = vrot.slane %v1603_v17, 4 }
 0x1d8   : > { %v1973_v61 = vmax.f32 %v1971_v24, %v1972_v39  ;;  %v1611_v41 = vrot.slane %v1610_v9, 4  ;;  %v1617_v26 = vsel %vm1294_vm3, %v823_v19, -inf  ;;  %v1624_v22 = vsel %vm1294_vm3, %v825_v21, -inf }
 0x1d9   : > { %v1979_v54 = vrot.slane %v1978_v8, 1  ;;  %v1986_v16 = vrot.slane %v1985_v0, 1  ;;  %v1992_v62 = vmax.f32 %v1990_v7, %v1991_v27  ;;  %v1605_v33 = vmax.f32 %v1603_v17, %v1604_v57 }
 0x1da   : > { %v2336_v55 = vsel %vm2191_vm4, %v1973_v61, -inf  ;;  %v1612_v38 = vmax.f32 %v1610_v9, %v1611_v41  ;;  %v1618_v2 = vrot.slane %v1617_v26, 4  ;;  %v1625_v34 = vrot.slane %v1624_v22, 4 }
 0x1db   : > { %v1980_v46 = vmax.f32 %v1978_v8, %v1979_v54  ;;  %v1987_v15 = vmax.f32 %v1985_v0, %v1986_v16  ;;  %v1993_v3 = vrot.slane %v1992_v62, 1  ;;  %v2338_v13 = vmax.f32 %v2336_v55, %v3916_v43 }
 0x1dc   : > { %v1606_v40 = vrot.slane %v1605_v33, 2  ;;  %v1613_v5 = vrot.slane %v1612_v38, 2  ;;  %v1619_v44 = vmax.f32 %v1617_v26, %v1618_v2  ;;  %v1626_v60 = vmax.f32 %v1624_v22, %v1625_v34 }
 0x1dd   : > { %v1994_v45 = vmax.f32 %v1992_v62, %v1993_v3  ;;  %v2339_v12 = vsel %vm2191_vm4, %v1980_v46, -inf  ;;  %v2342_v6 = vsel %vm2191_vm4, %v1987_v15, -inf  ;;  %v3068_v25 = vpack.c.bf16 %v2338_v13, %v2338_v13 }
 0x1de   : > { %v2341_v14 = vmax.f32 %v2339_v12, %v3919_v30  ;;  %v2344_v42 = vmax.f32 %v2342_v6, %v3922_v32  ;;  %v1607_v23 = vmax.f32 %v1605_v33, %v1606_v40  ;;  %v1614_v35 = vmax.f32 %v1612_v38, %v1613_v5 }
 0x1df   : > { %v2345_v36 = vsel %vm2191_vm4, %v1994_v45, -inf  ;;  %v2688_v37 = vunpack.c.l.b16 %v3068_v25  ;;  %v1620_v43 = vrot.slane %v1619_v44, 2  ;;  %v1627_v19 = vrot.slane %v1626_v60, 2 }
 0x1e0   : > { %v2347_v11 = vmax.f32 %v2345_v36, %v3927_v31  ;;  %v3069_v24 = vpack.c.bf16 %v2341_v14, %v2341_v14  ;;  %v3070_v1 = vpack.c.bf16 %v2344_v42, %v2344_v42  ;;  %v1608_v4 = vrot.slane %v1607_v23, 1 }
 0x1e1   : > { %v1615_v10 = vrot.slane %v1614_v35, 1  ;;  %v1621_v7 = vmax.f32 %v1619_v44, %v1620_v43  ;;  %v1628_v39 = vmax.f32 %v1626_v60, %v1627_v19  ;;  %v1081_v30 = vcombine.high %v3935_v28, %v3935_v28 }
 0x1e2   : > { %v3071_v21 = vpack.c.bf16 %v2347_v11, %v2347_v11  ;;  %v2689_v32 = vunpack.c.l.b16 %v3069_v24  ;;  %v2690_v17 = vunpack.c.l.b16 %v3070_v1  ;;  %v1609_v9 = vmax.f32 %v1607_v23, %v1608_v4 }
 0x1e3   : > { %v1616_v8 = vmax.f32 %v1614_v35, %v1615_v10  ;;  %v1622_v0 = vrot.slane %v1621_v7, 1  ;;  %v1629_v27 = vrot.slane %v1628_v39, 1  ;;  %v1088_v57 = vrot.slane %v3935_v28, %v3424_v29 }
 0x1e4   : > { %v2691_v31 = vunpack.c.l.b16 %v3071_v21  ;;  %v2753_v61 = vsel %vm2704_vm5, %v2689_v32, %v2688_v37  ;;  %v3975_v41 = vsel %vm2191_vm4, %v1609_v9, -inf  ;;  %v1095_v26 = vrot.slane %v1081_v30, %v3424_v29 }
 0x1e5   : > { %v2754_v22 = vsel %vm2706_vm6, %v2690_v17, %v2753_v61  ;;  %v1623_v54 = vmax.f32 %v1621_v7, %v1622_v0  ;;  %v1630_v16 = vmax.f32 %v1628_v39, %v1629_v27  ;;  %v3980_v62 = vsel %vm2191_vm4, %v1616_v8, -inf }
 0x1e6   : > { %v1096_v33 = vcombine.high %v1088_v57, %v1088_v57  ;;  %v1097_v55 = vcombine.high %v1095_v26, %v1095_v26  ;;  %v2051_v38 = vsel %vm1294_vm3, %v1088_v57, -inf  ;;  %v2065_v28 = vsel %vm1294_vm3, %v1095_v26, -inf }
 0x1e7   : > { %v3985_v2 = vsel %vm2191_vm4, %v1623_v54, -inf  ;;  %v3988_v34 = vsel %vm2191_vm4, %v1630_v16, -inf  ;;  %v2052_v46 = vrot.slane %v2051_v38, 4  ;;  %v2066_v15 = vrot.slane %v2065_v28, 4 }
 0x1e8   : > { %v2058_v3 = vsel %vm1294_vm3, %v1096_v33, -inf  ;;  %v2072_v13 = vsel %vm1294_vm3, %v1097_v55, -inf  ;;  %v467_v40 = vadd.f32 %v3771_v50, %v3705_v59  ;;  %v3997_v5 = vsel %vm2708_vm7, %v3951_v47, %v3955_v51 }
 0x1e9   : > { %v2053_v44 = vmax.f32 %v2051_v38, %v2052_v46  ;;  %v2059_v60 = vrot.slane %v2058_v3, 4  ;;  %v2067_v45 = vmax.f32 %v2065_v28, %v2066_v15  ;;  %v2073_v12 = vrot.slane %v2072_v13, 4 }
 0x1ea   : > { %v567_v6 = vmax.f32 %v467_v40, 0.0  ;;  %v531_v25 = vadd.f32 %v3771_v50, %v3723_v49  ;;  %v4002_v14 = vsel %vm2708_vm7, %v2691_v31, %v2754_v22  ;;  %v488_v42 = vadd.f32 %v3771_v50, %v3742_v53 }
 0x1eb   : > { %v2054_v59 = vrot.slane %v2053_v44, 2  ;;  %v2060_v23 = vmax.f32 %v2058_v3, %v2059_v60  ;;  %v2068_v35 = vrot.slane %v2067_v45, 2  ;;  %v2074_v36 = vmax.f32 %v2072_v13, %v2073_v12 }
 0x1ec   : > { %v775_v47 = vcombine.high %v567_v6, %v567_v6  ;;  %v782_v51 = vrot.slane %v567_v6, %v3424_v29  ;;  %v583_v37 = vmax.f32 %v531_v25, 0.0  ;;  %v4007_v43 = vmax.f32 %v488_v42, 0.0 }
 0x1ed   : > { %v2055_v19 = vmax.f32 %v2053_v44, %v2054_v59  ;;  %v2061_v11 = vrot.slane %v2060_v23, 2  ;;  %v2069_v24 = vmax.f32 %v2067_v45, %v2068_v35  ;;  %v2075_v49 = vrot.slane %v2074_v36, 2 }
 0x1ee   : > { %v789_v1 = vrot.slane %v775_v47, %v3424_v29  ;;  %v790_v4 = vcombine.high %v782_v51, %v782_v51  ;;  %v1547_v10 = vsel %vm1294_vm3, %v782_v51, -inf  ;;  %v1047_v53 = vcombine.high %v583_v37, %v583_v37 }
 0x1ef   : > { %v2056_v50 = vrot.slane %v2055_v19, 1  ;;  %v2062_v7 = vmax.f32 %v2060_v23, %v2061_v11  ;;  %v2070_v39 = vrot.slane %v2069_v24, 1  ;;  %v2076_v30 = vmax.f32 %v2074_v36, %v2075_v49 }
 0x1f0   : > { %v791_v21 = vcombine.high %v789_v1, %v789_v1  ;;  %v1548_v32 = vrot.slane %v1547_v10, 4  ;;  %v1554_v17 = vsel %vm1294_vm3, %v790_v4, -inf  ;;  %v1561_v9 = vsel %vm1294_vm3, %v789_v1, -inf }
 0x1f1   : > { %v2057_v8 = vmax.f32 %v2055_v19, %v2056_v50  ;;  %v2063_v0 = vrot.slane %v2062_v7, 1  ;;  %v2071_v27 = vmax.f32 %v2069_v24, %v2070_v39  ;;  %v2077_v57 = vrot.slane %v2076_v30, 1 }
 0x1f2   : > { %v1549_v31 = vmax.f32 %v1547_v10, %v1548_v32  ;;  %v1555_v61 = vrot.slane %v1554_v17, 4  ;;  %v1562_v26 = vrot.slane %v1561_v9, 4  ;;  %v1568_v22 = vsel %vm1294_vm3, %v791_v21, -inf }
 0x1f3   : > { %v2064_v54 = vmax.f32 %v2062_v7, %v2063_v0  ;;  %v2078_v16 = vmax.f32 %v2076_v30, %v2077_v57  ;;  %v4015_v33 = vsel %vm2191_vm4, %v2057_v8, -inf  ;;  %v4018_v55 = vsel %vm2191_vm4, %v2071_v27, -inf }
 0x1f4   : > { %v1550_v38 = vrot.slane %v1549_v31, 2  ;;  %v1556_v28 = vmax.f32 %v1554_v17, %v1555_v61  ;;  %v1563_v46 = vmax.f32 %v1561_v9, %v1562_v26  ;;  %v1569_v15 = vrot.slane %v1568_v22, 4 }
 0x1f5   : > { %v4021_v3 = vsel %vm2191_vm4, %v2064_v54, -inf  ;;  %v4024_v13 = vsel %vm2191_vm4, %v2078_v16, -inf  ;;  %v1054_v40 = vrot.slane %v583_v37, %v3424_v29  ;;  %v1061_v44 = vrot.slane %v1047_v53, %v3424_v29 }
 0x1f6   : > { %v1551_v60 = vmax.f32 %v1549_v31, %v1550_v38  ;;  %v1557_v45 = vrot.slane %v1556_v28, 2  ;;  %v1564_v12 = vrot.slane %v1563_v46, 2  ;;  %v1570_v6 = vmax.f32 %v1568_v22, %v1569_v15 }
 0x1f7   : > { %v1062_v25 = vcombine.high %v1054_v40, %v1054_v40  ;;  %v1063_v42 = vcombine.high %v1061_v44, %v1061_v44  ;;  %v1995_v59 = vsel %vm1294_vm3, %v1054_v40, -inf  ;;  %v2009_v23 = vsel %vm1294_vm3, %v1061_v44, -inf }
 0x1f8   : > { %v1552_v35 = vrot.slane %v1551_v60, 1  ;;  %v1558_v36 = vmax.f32 %v1556_v28, %v1557_v45  ;;  %v1565_v47 = vmax.f32 %v1563_v46, %v1564_v12  ;;  %v1571_v51 = vrot.slane %v1570_v6, 2 }
 0x1f9   : > { %v1996_v19 = vrot.slane %v1995_v59, 4  ;;  %v2002_v11 = vsel %vm1294_vm3, %v1062_v25, -inf  ;;  %v2010_v37 = vrot.slane %v2009_v23, 4  ;;  %v2016_v24 = vsel %vm1294_vm3, %v1063_v42, -inf }
 0x1fa   : > { %v1553_v49 = vmax.f32 %v1551_v60, %v1552_v35  ;;  %v1559_v1 = vrot.slane %v1558_v36, 1  ;;  %v1566_v4 = vrot.slane %v1565_v47, 1  ;;  %v1572_v10 = vmax.f32 %v1570_v6, %v1571_v51 }
 0x1fb   : > { %v1997_v53 = vmax.f32 %v1995_v59, %v1996_v19  ;;  %v2003_v50 = vrot.slane %v2002_v11, 4  ;;  %v2011_v7 = vmax.f32 %v2009_v23, %v2010_v37  ;;  %v2017_v39 = vrot.slane %v2016_v24, 4 }
 0x1fc   : > { %v1560_v30 = vmax.f32 %v1558_v36, %v1559_v1  ;;  %v1567_v21 = vmax.f32 %v1565_v47, %v1566_v4  ;;  %v1573_v32 = vrot.slane %v1572_v10, 1  ;;  %v2252_v17 = vsel %vm2191_vm4, %v1553_v49, -inf }
 0x1fd   : > { %v2254_v9 = vmax.f32 %v2252_v17, %v3975_v41  ;;  %v1998_v8 = vrot.slane %v1997_v53, 2  ;;  %v2004_v0 = vmax.f32 %v2002_v11, %v2003_v50  ;;  %v2012_v27 = vrot.slane %v2011_v7, 2 }
 0x1fe   : > { %v1574_v57 = vmax.f32 %v1572_v10, %v1573_v32  ;;  %v2255_v31 = vsel %vm2191_vm4, %v1560_v30, -inf  ;;  %v2258_v61 = vsel %vm2191_vm4, %v1567_v21, -inf  ;;  %v2018_v26 = vmax.f32 %v2016_v24, %v2017_v39 }
 0x1ff   : > { %v2257_v22 = vmax.f32 %v2255_v31, %v3980_v62  ;;  %v2260_v54 = vmax.f32 %v2258_v61, %v3985_v2  ;;  %v3040_v16 = vpack.c.bf16 %v2254_v9, %v2254_v9  ;;  %v1999_v38 = vmax.f32 %v1997_v53, %v1998_v8 }
 0x200   : > { %v2261_v28 = vsel %vm2191_vm4, %v1574_v57, -inf  ;;  %v2005_v46 = vrot.slane %v2004_v0, 2  ;;  %v2013_v15 = vmax.f32 %v2011_v7, %v2012_v27  ;;  %v2019_v41 = vrot.slane %v2018_v26, 2 }
 0x201   : > { %v2263_v40 = vmax.f32 %v2261_v28, %v3988_v34  ;;  %v3041_v44 = vpack.c.bf16 %v2257_v22, %v2257_v22  ;;  %v3042_v60 = vpack.c.bf16 %v2260_v54, %v2260_v54  ;;  %v2660_v45 = vunpack.c.l.b16 %v3040_v16 }
 0x202   : > { %v2000_v12 = vrot.slane %v1999_v38, 1  ;;  %v2006_v6 = vmax.f32 %v2004_v0, %v2005_v46  ;;  %v2014_v25 = vrot.slane %v2013_v15, 1  ;;  %v2020_v42 = vmax.f32 %v2018_v26, %v2019_v41  ;;  %v4069_v41 = vld [vmem:[%s4302_s2] ss:$0 sm:$0xff] }
 0x203   : > { %v3043_v59 = vpack.c.bf16 %v2263_v40, %v2263_v40  ;;  %v2661_v62 = vunpack.c.l.b16 %v3041_v44  ;;  %v2662_v23 = vunpack.c.l.b16 %v3042_v60  ;;  %v2728_v2 = vsel %vm2710_vm8, %v2660_v45, %v3997_v5 }
 0x204   : > { %v2001_v35 = vmax.f32 %v1999_v38, %v2000_v12  ;;  %v2007_v36 = vrot.slane %v2006_v6, 1  ;;  %v2015_v47 = vmax.f32 %v2013_v15, %v2014_v25  ;;  %v2021_v51 = vrot.slane %v2020_v42, 1 }
 0x205   : > { %v2663_v19 = vunpack.c.l.b16 %v3043_v59  ;;  %v2729_v34 = vsel %vm2712_vm9, %v2661_v62, %v2728_v2  ;;  %v860_v11 = vcombine.high %v4007_v43, %v4007_v43  ;;  %v867_v37 = vrot.slane %v4007_v43, %v3424_v29 }
 0x206   : > { %v2730_v24 = vsel %vm2714_vm10, %v2662_v23, %v2729_v34  ;;  %v2008_v49 = vmax.f32 %v2006_v6, %v2007_v36  ;;  %v2022_v1 = vmax.f32 %v2020_v42, %v2021_v51  ;;  %v2348_v5 = vsel %vm2191_vm4, %v2001_v35, -inf }
 0x207   : > { %v2731_v4 = vsel %vm2716_vm11, %v2663_v19, %v2730_v24  ;;  %v2350_v10 = vmax.f32 %v2348_v5, %v4015_v33  ;;  %v2354_v53 = vsel %vm2191_vm4, %v2015_v47, -inf  ;;  %v874_v50 = vrot.slane %v860_v11, %v3424_v29 }
 0x208   : > { %v2769_v7 = vpack.c.b16 %v2731_v4, %v2731_v4  ;;  %v2351_v39 = vsel %vm2191_vm4, %v2008_v49, -inf  ;;  %v2356_v43 = vmax.f32 %v2354_v53, %v4018_v55  ;;  %v2357_v30 = vsel %vm2191_vm4, %v2022_v1, -inf }
 0x209   : > { %v2353_v21 = vmax.f32 %v2351_v39, %v4021_v3  ;;  %v2359_v32 = vmax.f32 %v2357_v30, %v4024_v13  ;;  %v3072_v17 = vpack.c.bf16 %v2350_v10, %v2350_v10  ;;  %v875_v9 = vcombine.high %v867_v37, %v867_v37 }
 0x20a   : > { %2786 = vst.msk [vmem:[%s3647_s10 + $0x8] sm:$0xf] %vm2783_vm12, %v2769_v7  ;;  %v3074_v33 = vpack.c.bf16 %v2356_v43, %v2356_v43  ;;  %v876_v8 = vcombine.high %v874_v50, %v874_v50  ;;  %v1687_v0 = vsel %vm1294_vm3, %v867_v37, -inf  ;;  %v1701_v27 = vsel %vm1294_vm3, %v874_v50, -inf }
 0x20b   : > { %v3073_v57 = vpack.c.bf16 %v2353_v21, %v2353_v21  ;;  %v3075_v31 = vpack.c.bf16 %v2359_v32, %v2359_v32  ;;  %v2692_v61 = vunpack.c.l.b16 %v3072_v17  ;;  %v1688_v55 = vrot.slane %v1687_v0, 4 }
 0x20c   : > { %v1694_v26 = vsel %vm1294_vm3, %v875_v9, -inf  ;;  %v1702_v22 = vrot.slane %v1701_v27, 4  ;;  %v1708_v3 = vsel %vm1294_vm3, %v876_v8, -inf  ;;  %v2694_v54 = vunpack.c.l.b16 %v3074_v33 }
 0x20d   : > { %v2693_v13 = vunpack.c.l.b16 %v3073_v57  ;;  %v2756_v16 = vsel %vm2710_vm8, %v2692_v61, %v4002_v14  ;;  %v1689_v38 = vmax.f32 %v1687_v0, %v1688_v55  ;;  %v1695_v28 = vrot.slane %v1694_v26, 4 }
 0x20e   : > { %v1703_v46 = vmax.f32 %v1701_v27, %v1702_v22  ;;  %v1709_v15 = vrot.slane %v1708_v3, 4  ;;  %v552_v40 = vadd.f32 %v4069_v41, %v3779_v58  ;;  %v2695_v44 = vunpack.c.l.b16 %v3075_v31 }
 0x20f   : > { %v2757_v60 = vsel %vm2712_vm9, %v2693_v13, %v2756_v16  ;;  %v1690_v45 = vrot.slane %v1689_v38, 2  ;;  %v480_v12 = vadd.f32 %v4069_v41, %v3803_v48  ;;  %v1696_v6 = vmax.f32 %v1694_v26, %v1695_v28 }
 0x210   : > { %v2758_v14 = vsel %vm2714_vm10, %v2694_v54, %v2757_v60  ;;  %v1704_v25 = vrot.slane %v1703_v46, 2  ;;  %v1710_v42 = vmax.f32 %v1708_v3, %v1709_v15  ;;  %v588_v23 = vmax.f32 %v552_v40, 0.0 }
 0x211   : > { %v2759_v59 = vsel %vm2716_vm11, %v2695_v44, %v2758_v14  ;;  %v1691_v62 = vmax.f32 %v1689_v38, %v1690_v45  ;;  %v570_v2 = vmax.f32 %v480_v12, 0.0  ;;  %v1697_v58 = vrot.slane %v1696_v6, 2 }
 0x212   : > { %v2773_v35 = vpack.c.b16 %v2759_v59, %v2759_v59  ;;  %v1705_v36 = vmax.f32 %v1703_v46, %v1704_v25  ;;  %v1711_v47 = vrot.slane %v1710_v42, 2  ;;  %v1132_v19 = vcombine.high %v588_v23, %v588_v23 }
 0x213   : > { %v1692_v51 = vrot.slane %v1691_v62, 1  ;;  %v1139_v34 = vrot.slane %v588_v23, %v3424_v29  ;;  %v4081_v48 = vadd.f32 %v4069_v41, %v3812_v20  ;;  %v1698_v11 = vmax.f32 %v1696_v6, %v1697_v58 }
 0x214   : > { %2790 = vst.msk [vmem:[%s3647_s10 + $0x18] sm:$0xf] %vm2783_vm12, %v2773_v35  ;;  %v1706_v37 = vrot.slane %v1705_v36, 1  ;;  %v1712_v24 = vmax.f32 %v1710_v42, %v1711_v47  ;;  %v826_v49 = vcombine.high %v570_v2, %v570_v2  ;;  %v1146_v5 = vrot.slane %v1132_v19, %v3424_v29 }
 0x215   : > { %v1693_v1 = vmax.f32 %v1691_v62, %v1692_v51  ;;  %v1147_v4 = vcombine.high %v1139_v34, %v1139_v34  ;;  %v2135_v10 = vsel %vm1294_vm3, %v1139_v34, -inf  ;;  %v1699_v53 = vrot.slane %v1698_v11, 1 }
 0x216   : > { %v1707_v50 = vmax.f32 %v1705_v36, %v1706_v37  ;;  %v1713_v7 = vrot.slane %v1712_v24, 1  ;;  %v2136_v39 = vrot.slane %v2135_v10, 4  ;;  %v1148_v43 = vcombine.high %v1146_v5, %v1146_v5 }
 0x217   : > { %v2142_v20 = vsel %vm1294_vm3, %v1147_v4, -inf  ;;  %v2149_v30 = vsel %vm1294_vm3, %v1146_v5, -inf  ;;  %v833_v21 = vrot.slane %v570_v2, %v3424_v29  ;;  %v1700_v32 = vmax.f32 %v1698_v11, %v1699_v53 }
 0x218   : > { %v1714_v17 = vmax.f32 %v1712_v24, %v1713_v7  ;;  %v4091_v9 = vsel %vm2191_vm4, %v1693_v1, -inf  ;;  %v2137_v33 = vmax.f32 %v2135_v10, %v2136_v39  ;;  %v2143_v8 = vrot.slane %v2142_v20, 4 }
 0x219   : > { %v2150_v0 = vrot.slane %v2149_v30, 4  ;;  %v2156_v27 = vsel %vm1294_vm3, %v1148_v43, -inf  ;;  %v840_v57 = vrot.slane %v826_v49, %v3424_v29  ;;  %v4096_v31 = vsel %vm2191_vm4, %v1700_v32, -inf }
 0x21a   : > { %v4099_v61 = vsel %vm2191_vm4, %v1707_v50, -inf  ;;  %v2138_v55 = vrot.slane %v2137_v33, 2  ;;  %v2157_v26 = vrot.slane %v2156_v27, 4  ;;  %v2144_v22 = vmax.f32 %v2142_v20, %v2143_v8 }
 0x21b   : > { %v2151_v3 = vmax.f32 %v2149_v30, %v2150_v0  ;;  %v841_v13 = vcombine.high %v833_v21, %v833_v21  ;;  %v842_v54 = vcombine.high %v840_v57, %v840_v57  ;;  %v1631_v28 = vsel %vm1294_vm3, %v833_v21, -inf }
 0x21c   : > { %v2139_v16 = vmax.f32 %v2137_v33, %v2138_v55  ;;  %v2158_v38 = vmax.f32 %v2156_v27, %v2157_v26  ;;  %v1645_v46 = vsel %vm1294_vm3, %v840_v57, -inf  ;;  %v2145_v15 = vrot.slane %v2144_v22, 2 }
 0x21d   : > { %v2152_v40 = vrot.slane %v2151_v3, 2  ;;  %v1632_v44 = vrot.slane %v1631_v28, 4  ;;  %v1638_v60 = vsel %vm1294_vm3, %v841_v13, -inf  ;;  %v1646_v6 = vrot.slane %v1645_v46, 4 }
 0x21e   : > { %v2140_v45 = vrot.slane %v2139_v16, 1  ;;  %v2159_v12 = vrot.slane %v2158_v38, 2  ;;  %v1639_v14 = vrot.slane %v1638_v60, 4  ;;  %v2146_v25 = vmax.f32 %v2144_v22, %v2145_v15 }
 0x21f   : > { %v2153_v42 = vmax.f32 %v2151_v3, %v2152_v40  ;;  %v1633_v59 = vmax.f32 %v1631_v28, %v1632_v44  ;;  %v1652_v62 = vsel %vm1294_vm3, %v842_v54, -inf  ;;  %v1647_v58 = vmax.f32 %v1645_v46, %v1646_v6 }
 0x220   : > { %v2141_v23 = vmax.f32 %v2139_v16, %v2140_v45  ;;  %v2160_v2 = vmax.f32 %v2158_v38, %v2159_v12  ;;  %v1640_v35 = vmax.f32 %v1638_v60, %v1639_v14  ;;  %v2147_v36 = vrot.slane %v2146_v25, 1 }
 0x221   : > { %v2154_v47 = vrot.slane %v2153_v42, 1  ;;  %v1634_v51 = vrot.slane %v1633_v59, 2  ;;  %v1653_v19 = vrot.slane %v1652_v62, 4  ;;  %v2274_v34 = vsel %vm2191_vm4, %v1714_v17, -inf }
 0x222   : > { %v2161_v11 = vrot.slane %v2160_v2, 1  ;;  %v1641_v37 = vrot.slane %v1640_v35, 2  ;;  %v1648_v24 = vrot.slane %v1647_v58, 2  ;;  %v2148_v49 = vmax.f32 %v2146_v25, %v2147_v36 }
 0x223   : > { %v2155_v1 = vmax.f32 %v2153_v42, %v2154_v47  ;;  %v1635_v5 = vmax.f32 %v1633_v59, %v1634_v51  ;;  %v1654_v4 = vmax.f32 %v1652_v62, %v1653_v19  ;;  %v4107_v10 = vsel %vm2191_vm4, %v2141_v23, -inf }
 0x224   : > { %v1642_v53 = vmax.f32 %v1640_v35, %v1641_v37  ;;  %v1649_v50 = vmax.f32 %v1647_v58, %v1648_v24  ;;  %v586_v7 = vmax.f32 %v4081_v48, 0.0  ;;  %v2162_v39 = vmax.f32 %v2160_v2, %v2161_v11 }
 0x225   : > { %v4111_v43 = vsel %vm2191_vm4, %v2148_v49, -inf  ;;  %v1636_v20 = vrot.slane %v1635_v5, 1  ;;  %v1655_v30 = vrot.slane %v1654_v4, 2  ;;  %v4114_v21 = vsel %vm2191_vm4, %v2155_v1, -inf }
 0x226   : > { %v1643_v32 = vrot.slane %v1642_v53, 1  ;;  %v1650_v17 = vrot.slane %v1649_v50, 1  ;;  %v1098_v33 = vcombine.high %v586_v7, %v586_v7  ;;  %v1105_v27 = vrot.slane %v586_v7, %v3424_v29 }
 0x227   : > { %v1637_v8 = vmax.f32 %v1635_v5, %v1636_v20  ;;  %v1656_v0 = vmax.f32 %v1654_v4, %v1655_v30  ;;  %v491_v57 = vadd.f32 %v4069_v41, %v3856_v56  ;;  %v555_v22 = vadd.f32 %v4069_v41, %v3876_v63 }
 0x228   : > { %v1644_v48 = vmax.f32 %v1642_v53, %v1643_v32  ;;  %v1651_v55 = vmax.f32 %v1649_v50, %v1650_v17  ;;  %v1112_v26 = vrot.slane %v1098_v33, %v3424_v29  ;;  %v1113_v54 = vcombine.high %v1105_v27, %v1105_v27 }
 0x229   : > { %v1657_v3 = vrot.slane %v1656_v0, 1  ;;  %v2264_v13 = vsel %vm2191_vm4, %v1637_v8, -inf  ;;  %v2079_v16 = vsel %vm1294_vm3, %v1105_v27, -inf  ;;  %v2370_v36 = vsel %vm2191_vm4, %v2162_v39, -inf }
 0x22a   : > { %v2266_v38 = vmax.f32 %v2264_v13, %v4091_v9  ;;  %v2267_v28 = vsel %vm2191_vm4, %v1644_v48, -inf  ;;  %v2270_v46 = vsel %vm2191_vm4, %v1651_v55, -inf  ;;  %v1114_v56 = vcombine.high %v1112_v26, %v1112_v26 }
 0x22b   : > { %v1658_v15 = vmax.f32 %v1656_v0, %v1657_v3  ;;  %v2269_v40 = vmax.f32 %v2267_v28, %v4096_v31  ;;  %v2272_v44 = vmax.f32 %v2270_v46, %v4099_v61  ;;  %v2080_v60 = vrot.slane %v2079_v16, 4 }
 0x22c   : > { %v3044_v63 = vpack.c.bf16 %v2266_v38, %v2266_v38  ;;  %v2086_v45 = vsel %vm1294_vm3, %v1113_v54, -inf  ;;  %v2093_v12 = vsel %vm1294_vm3, %v1112_v26, -inf  ;;  %v2100_v14 = vsel %vm1294_vm3, %v1114_v56, -inf }
 0x22d   : > { %v2273_v9 = vsel %vm2191_vm4, %v1658_v15, -inf  ;;  %v3045_v6 = vpack.c.bf16 %v2269_v40, %v2269_v40  ;;  %v3046_v25 = vpack.c.bf16 %v2272_v44, %v2272_v44  ;;  %v2081_v42 = vmax.f32 %v2079_v16, %v2080_v60 }
 0x22e   : > { %v4133_v59 = vmax.f32 %v2273_v9, %v2274_v34  ;;  %v2664_v62 = vunpack.c.l.b16 %v3044_v63  ;;  %v2087_v23 = vrot.slane %v2086_v45, 4  ;;  %v2094_v31 = vrot.slane %v2093_v12, 4 }
 0x22f   : > { %v2665_v2 = vunpack.c.l.b16 %v3045_v6  ;;  %v2666_v61 = vunpack.c.l.b16 %v3046_v25  ;;  %v2082_v35 = vrot.slane %v2081_v42, 2  ;;  %v2101_v58 = vrot.slane %v2100_v14, 4 }
 0x230   : > { %v2088_v47 = vmax.f32 %v2086_v45, %v2087_v23  ;;  %v2095_v51 = vmax.f32 %v2093_v12, %v2094_v31  ;;  %v573_v19 = vmax.f32 %v491_v57, 0.0  ;;  %v589_v49 = vmax.f32 %v555_v22, 0.0 }
 0x231   : > { %v2732_v11 = vsel %vm2704_vm5, %v2665_v2, %v2664_v62  ;;  %v2083_v37 = vmax.f32 %v2081_v42, %v2082_v35  ;;  %v2102_v24 = vmax.f32 %v2100_v14, %v2101_v58  ;;  %v3047_v34 = vpack.c.bf16 %v4133_v59, %v4133_v59 }
 0x232   : > { %v4140_v1 = vsel %vm2706_vm6, %v2666_v61, %v2732_v11  ;;  %v2089_v5 = vrot.slane %v2088_v47, 2  ;;  %v2096_v4 = vrot.slane %v2095_v51, 2  ;;  %v877_v7 = vcombine.high %v573_v19, %v573_v19 }
 0x233   : > { %v2084_v53 = vrot.slane %v2083_v37, 1  ;;  %v2103_v50 = vrot.slane %v2102_v24, 2  ;;  %v884_v39 = vrot.slane %v573_v19, %v3424_v29  ;;  %v1149_v32 = vcombine.high %v589_v49, %v589_v49 }
 0x234   : > { %v2090_v20 = vmax.f32 %v2088_v47, %v2089_v5  ;;  %v2097_v30 = vmax.f32 %v2095_v51, %v2096_v4  ;;  %v1156_v17 = vrot.slane %v589_v49, %v3424_v29  ;;  %v891_v0 = vrot.slane %v877_v7, %v3424_v29 }
 0x235   : > { %v2085_v33 = vmax.f32 %v2083_v37, %v2084_v53  ;;  %v2104_v8 = vmax.f32 %v2102_v24, %v2103_v50  ;;  %v892_v27 = vcombine.high %v884_v39, %v884_v39  ;;  %v1715_v55 = vsel %vm1294_vm3, %v884_v39, -inf }
 0x236   : > { %v2091_v57 = vrot.slane %v2090_v20, 1  ;;  %v2098_v48 = vrot.slane %v2097_v30, 1  ;;  %v1163_v26 = vrot.slane %v1149_v32, %v3424_v29  ;;  %v893_v13 = vcombine.high %v891_v0, %v891_v0 }
 0x237   : > { %v2105_v22 = vrot.slane %v2104_v8, 1  ;;  %v2360_v3 = vsel %vm2191_vm4, %v2085_v33, -inf  ;;  %v1716_v54 = vrot.slane %v1715_v55, 4  ;;  %v1722_v46 = vsel %vm1294_vm3, %v892_v27, -inf }
 0x238   : > { %v2092_v16 = vmax.f32 %v2090_v20, %v2091_v57  ;;  %v2099_v38 = vmax.f32 %v2097_v30, %v2098_v48  ;;  %v2362_v28 = vmax.f32 %v2360_v3, %v4107_v10  ;;  %v1723_v40 = vrot.slane %v1722_v46, 4 }
 0x239   : > { %v2106_v56 = vmax.f32 %v2104_v8, %v2105_v22  ;;  %v1717_v15 = vmax.f32 %v1715_v55, %v1716_v54  ;;  %v1729_v44 = vsel %vm1294_vm3, %v891_v0, -inf  ;;  %v1736_v61 = vsel %vm1294_vm3, %v893_v13, -inf }
 0x23a   : > { %v2363_v60 = vsel %vm2191_vm4, %v2092_v16, -inf  ;;  %v2366_v63 = vsel %vm2191_vm4, %v2099_v38, -inf  ;;  %v3076_v45 = vpack.c.bf16 %v2362_v28, %v2362_v28  ;;  %v1730_v12 = vrot.slane %v1729_v44, 4 }
 0x23b   : > { %v2365_v14 = vmax.f32 %v2363_v60, %v4111_v43  ;;  %v2368_v9 = vmax.f32 %v2366_v63, %v4114_v21  ;;  %v2369_v6 = vsel %vm2191_vm4, %v2106_v56, -inf  ;;  %v1718_v10 = vrot.slane %v1717_v15, 2 }
 0x23c   : > { %v2371_v25 = vmax.f32 %v2369_v6, %v2370_v36  ;;  %v2696_v42 = vunpack.c.l.b16 %v3076_v45  ;;  %v1724_v59 = vmax.f32 %v1722_v46, %v1723_v40  ;;  %v1731_v62 = vmax.f32 %v1729_v44, %v1730_v12 }
 0x23d   : > { %v3077_v23 = vpack.c.bf16 %v2365_v14, %v2365_v14  ;;  %v3078_v31 = vpack.c.bf16 %v2368_v9, %v2368_v9  ;;  %v1719_v2 = vmax.f32 %v1717_v15, %v1718_v10  ;;  %v1737_v51 = vrot.slane %v1736_v61, 4 }
 0x23e   : > { %v3079_v35 = vpack.c.bf16 %v2371_v25, %v2371_v25  ;;  %v1725_v58 = vrot.slane %v1724_v59, 2  ;;  %v1732_v47 = vrot.slane %v1731_v62, 2  ;;  %v1164_v21 = vcombine.high %v1156_v17, %v1156_v17 }
 0x23f   : > { %v2697_v19 = vunpack.c.l.b16 %v3077_v23  ;;  %v2698_v43 = vunpack.c.l.b16 %v3078_v31  ;;  %v1720_v11 = vrot.slane %v1719_v2, 1  ;;  %v2667_v37 = vunpack.c.l.b16 %v3047_v34 }
 0x240   : > { %v1726_v24 = vmax.f32 %v1724_v59, %v1725_v58  ;;  %v1733_v49 = vmax.f32 %v1731_v62, %v1732_v47  ;;  %v1738_v36 = vmax.f32 %v1736_v61, %v1737_v51  ;;  %v1165_v53 = vcombine.high %v1163_v26, %v1163_v26 }
 0x241   : > { %v2760_v5 = vsel %vm2704_vm5, %v2697_v19, %v2696_v42  ;;  %v1721_v4 = vmax.f32 %v1719_v2, %v1720_v11  ;;  %v2163_v50 = vsel %vm1294_vm3, %v1156_v17, -inf  ;;  %v4162_v32 = vunpack.c.l.b16 %v3079_v35 }
 0x242   : > { %v4160_v7 = vsel %vm2706_vm6, %v2698_v43, %v2760_v5  ;;  %v1727_v39 = vrot.slane %v1726_v24, 1  ;;  %v1734_v20 = vrot.slane %v1733_v49, 1  ;;  %v1739_v30 = vrot.slane %v1738_v36, 2 }
 0x243   : > { %v2164_v33 = vrot.slane %v2163_v50, 4  ;;  %v2170_v34 = vsel %vm1294_vm3, %v1164_v21, -inf  ;;  %v2177_v8 = vsel %vm1294_vm3, %v1163_v26, -inf  ;;  %v2184_v17 = vsel %vm1294_vm3, %v1165_v53, -inf }
 0x244   : > { %v1728_v0 = vmax.f32 %v1726_v24, %v1727_v39  ;;  %v1735_v27 = vmax.f32 %v1733_v49, %v1734_v20  ;;  %v1740_v57 = vmax.f32 %v1738_v36, %v1739_v30  ;;  %v2171_v48 = vrot.slane %v2170_v34, 4 }
 0x245   : > { %v2165_v55 = vmax.f32 %v2163_v50, %v2164_v33  ;;  %v2178_v22 = vrot.slane %v2177_v8, 4  ;;  %v483_v3 = vadd.f32 %v4069_v41, %v3908_v18  ;;  %v4170_v54 = vsel %vm2191_vm4, %v1721_v4, -inf }
 0x246   : > { %v1741_v13 = vrot.slane %v1740_v57, 1  ;;  %v4173_v16 = vsel %vm2191_vm4, %v1728_v0, -inf  ;;  %v2172_v38 = vmax.f32 %v2170_v34, %v2171_v48  ;;  %v2185_v46 = vrot.slane %v2184_v17, 4 }
 0x247   : > { %v2166_v26 = vrot.slane %v2165_v55, 2  ;;  %v2179_v28 = vmax.f32 %v2177_v8, %v2178_v22  ;;  %v571_v56 = vmax.f32 %v483_v3, 0.0  ;;  %v4176_v15 = vsel %vm2191_vm4, %v1735_v27, -inf }
 0x248   : > { %v2173_v40 = vrot.slane %v2172_v38, 2  ;;  %v4180_v44 = vsel %vm2708_vm7, %v2667_v37, %v4140_v1  ;;  %v547_v18 = vadd.f32 %v4069_v41, %v3924_v52  ;;  %v2186_v45 = vmax.f32 %v2184_v17, %v2185_v46 }
 0x249   : > { %v2167_v60 = vmax.f32 %v2165_v55, %v2166_v26  ;;  %v2180_v63 = vrot.slane %v2179_v28, 2  ;;  %v843_v12 = vcombine.high %v571_v56, %v571_v56  ;;  %v1742_v14 = vmax.f32 %v1740_v57, %v1741_v13 }
 0x24a   : > { %v2174_v9 = vmax.f32 %v2172_v38, %v2173_v40  ;;  %v850_v6 = vrot.slane %v571_v56, %v3424_v29  ;;  %v587_v10 = vmax.f32 %v547_v18, 0.0  ;;  %v2187_v59 = vrot.slane %v2186_v45, 2 }
 0x24b   : > { %v2168_v25 = vrot.slane %v2167_v60, 1  ;;  %v2181_v42 = vmax.f32 %v2179_v28, %v2180_v63  ;;  %v857_v62 = vrot.slane %v843_v12, %v3424_v29  ;;  %v2286_v43 = vsel %vm2191_vm4, %v1742_v14, -inf }
 0x24c   : > { %v2175_v23 = vrot.slane %v2174_v9, 1  ;;  %v858_v1 = vcombine.high %v850_v6, %v850_v6  ;;  %v1659_v31 = vsel %vm1294_vm3, %v850_v6, -inf  ;;  %v1115_v2 = vcombine.high %v587_v10, %v587_v10 }
 0x24d   : > { %v2169_v52 = vmax.f32 %v2167_v60, %v2168_v25  ;;  %v2182_v41 = vrot.slane %v2181_v42, 1  ;;  %v2188_v61 = vmax.f32 %v2186_v45, %v2187_v59  ;;  %v859_v35 = vcombine.high %v857_v62, %v857_v62 }
 0x24e   : > { %v2176_v58 = vmax.f32 %v2174_v9, %v2175_v23  ;;  %v1660_v47 = vrot.slane %v1659_v31, 4  ;;  %v1666_v51 = vsel %vm1294_vm3, %v858_v1, -inf  ;;  %v1673_v19 = vsel %vm1294_vm3, %v857_v62, -inf }
 0x24f   : > { %v2183_v11 = vmax.f32 %v2181_v42, %v2182_v41  ;;  %v2189_v21 = vrot.slane %v2188_v61, 1  ;;  %v1667_v37 = vrot.slane %v1666_v51, 4  ;;  %v4191_v24 = vsel %vm2191_vm4, %v2169_v52, -inf }
 0x250   : > { %v1661_v49 = vmax.f32 %v1659_v31, %v1660_v47  ;;  %v1674_v36 = vrot.slane %v1673_v19, 4  ;;  %v1680_v5 = vsel %vm1294_vm3, %v859_v35, -inf  ;;  %v4197_v53 = vsel %vm2191_vm4, %v2176_v58, -inf }
 0x251   : > { %v4194_v4 = vmax.f32 %v2188_v61, %v2189_v21  ;;  %v1668_v50 = vmax.f32 %v1666_v51, %v1667_v37  ;;  %v1681_v39 = vrot.slane %v1680_v5, 4  ;;  %v1122_v33 = vrot.slane %v587_v10, %v3424_v29 }
 0x252   : > { %v1662_v20 = vrot.slane %v1661_v49, 2  ;;  %v1675_v30 = vmax.f32 %v1673_v19, %v1674_v36  ;;  %v1129_v34 = vrot.slane %v1115_v2, %v3424_v29  ;;  %v4202_v8 = vsel %vm2191_vm4, %v2183_v11, -inf }
 0x253   : > { %v1669_v0 = vrot.slane %v1668_v50, 2  ;;  %v1682_v27 = vmax.f32 %v1680_v5, %v1681_v39  ;;  %v4207_v57 = vsel %vm2708_vm7, %v4162_v32, %v4160_v7  ;;  %v1130_v22 = vcombine.high %v1122_v33, %v1122_v33 }
 0x254   : > { %v1663_v48 = vmax.f32 %v1661_v49, %v1662_v20  ;;  %v1676_v55 = vrot.slane %v1675_v30, 2  ;;  %v1131_v17 = vcombine.high %v1129_v34, %v1129_v34  ;;  %v2107_v38 = vsel %vm1294_vm3, %v1122_v33, -inf }
 0x255   : > { %v1670_v3 = vmax.f32 %v1668_v50, %v1669_v0  ;;  %v1683_v13 = vrot.slane %v1682_v27, 2  ;;  %v2121_v29 = vsel %vm1294_vm3, %v1129_v34, -inf  ;;  %v2108_v46 = vrot.slane %v2107_v38, 4 }
 0x256   : > { %v1664_v26 = vrot.slane %v1663_v48, 1  ;;  %v1677_v28 = vmax.f32 %v1675_v30, %v1676_v55  ;;  %v2114_v56 = vsel %vm1294_vm3, %v1130_v22, -inf  ;;  %v2122_v7 = vrot.slane %v2121_v29, 4 }
 0x257   : > { %v1671_v40 = vrot.slane %v1670_v3, 1  ;;  %v1684_v18 = vmax.f32 %v1682_v27, %v1683_v13  ;;  %v2115_v60 = vrot.slane %v2114_v56, 4  ;;  %v2109_v45 = vmax.f32 %v2107_v38, %v2108_v46 }
 0x258   : > { %v1665_v32 = vmax.f32 %v1663_v48, %v1664_v26  ;;  %v1678_v63 = vrot.slane %v1677_v28, 1  ;;  %v2128_v12 = vsel %vm1294_vm3, %v1131_v17, -inf  ;;  %v2123_v10 = vmax.f32 %v2121_v29, %v2122_v7 }
 0x259   : > { %v1672_v14 = vmax.f32 %v1670_v3, %v1671_v40  ;;  %v1685_v9 = vrot.slane %v1684_v18, 1  ;;  %v2116_v6 = vmax.f32 %v2114_v56, %v2115_v60  ;;  %v2110_v59 = vrot.slane %v2109_v45, 2 }
 0x25a   : > { %v1679_v25 = vmax.f32 %v1677_v28, %v1678_v63  ;;  %v2276_v42 = vsel %vm2191_vm4, %v1665_v32, -inf  ;;  %v2129_v62 = vrot.slane %v2128_v12, 4  ;;  %v2124_v35 = vrot.slane %v2123_v10, 2 }
 0x25b   : > { %v1686_v23 = vmax.f32 %v1684_v18, %v1685_v9  ;;  %v2278_v1 = vmax.f32 %v2276_v42, %v4170_v54  ;;  %v2279_v31 = vsel %vm2191_vm4, %v1672_v14, -inf  ;;  %v2117_v2 = vrot.slane %v2116_v6, 2 }
 0x25c   : > { %v2281_v52 = vmax.f32 %v2279_v31, %v4173_v16  ;;  %v2282_v41 = vsel %vm2191_vm4, %v1679_v25, -inf  ;;  %v2111_v61 = vmax.f32 %v2109_v45, %v2110_v59  ;;  %v2125_v49 = vmax.f32 %v2123_v10, %v2124_v35 }
 0x25d   : > { %v2284_v58 = vmax.f32 %v2282_v41, %v4176_v15  ;;  %v2285_v47 = vsel %vm2191_vm4, %v1686_v23, -inf  ;;  %v3048_v51 = vpack.c.bf16 %v2278_v1, %v2278_v1  ;;  %v2118_v19 = vmax.f32 %v2116_v6, %v2117_v2 }
 0x25e   : > { %v2287_v11 = vmax.f32 %v2285_v47, %v2286_v43  ;;  %v3049_v21 = vpack.c.bf16 %v2281_v52, %v2281_v52  ;;  %v2112_v37 = vrot.slane %v2111_v61, 1  ;;  %v2130_v50 = vmax.f32 %v2128_v12, %v2129_v62 }
 0x25f   : > { %v3050_v54 = vpack.c.bf16 %v2284_v58, %v2284_v58  ;;  %v2668_v36 = vunpack.c.l.b16 %v3048_v51  ;;  %v2119_v5 = vrot.slane %v2118_v19, 1  ;;  %v2126_v30 = vrot.slane %v2125_v49, 1 }
 0x260   : > { %v3051_v39 = vpack.c.bf16 %v2287_v11, %v2287_v11  ;;  %v2669_v16 = vunpack.c.l.b16 %v3049_v21  ;;  %v2113_v20 = vmax.f32 %v2111_v61, %v2112_v37  ;;  %v2131_v0 = vrot.slane %v2130_v50, 2 }
 0x261   : > { %v2670_v33 = vunpack.c.l.b16 %v3050_v54  ;;  %v2735_v15 = vsel %vm2710_vm8, %v2668_v36, %v4180_v44  ;;  %v2120_v34 = vmax.f32 %v2118_v19, %v2119_v5  ;;  %v2127_v48 = vmax.f32 %v2125_v49, %v2126_v30 }
 0x262   : > { %v2671_v27 = vunpack.c.l.b16 %v3051_v39  ;;  %v2736_v43 = vsel %vm2712_vm9, %v2669_v16, %v2735_v15  ;;  %v2372_v55 = vsel %vm2191_vm4, %v2113_v20, -inf  ;;  %v2132_v17 = vmax.f32 %v2130_v50, %v2131_v0 }
 0x263   : > { %v2737_v22 = vsel %vm2714_vm10, %v2670_v33, %v2736_v43  ;;  %v2374_v3 = vmax.f32 %v2372_v55, %v4191_v24  ;;  %v2375_v13 = vsel %vm2191_vm4, %v2120_v34, -inf  ;;  %v2378_v29 = vsel %vm2191_vm4, %v2127_v48, -inf }
 0x264   : > { %v2738_v38 = vsel %vm2716_vm11, %v2671_v27, %v2737_v22  ;;  %v2377_v44 = vmax.f32 %v2375_v13, %v4197_v53  ;;  %v2133_v28 = vrot.slane %v2132_v17, 1  ;;  %v2380_v46 = vmax.f32 %v2378_v29, %v4202_v8 }
 0x265   : > { %v2770_v26 = vpack.c.b16 %v2738_v38, %v2738_v38  ;;  %v3080_v56 = vpack.c.bf16 %v2374_v3, %v2374_v3  ;;  %v2382_v18 = vsel %vm2191_vm4, %v4194_v4, -inf }
 0x266   : > { %v3081_v40 = vpack.c.bf16 %v2377_v44, %v2377_v44  ;;  %v2134_v24 = vmax.f32 %v2132_v17, %v2133_v28  ;;  %v3082_v60 = vpack.c.bf16 %v2380_v46, %v2380_v46 }
 0x267   : > { %2787 = vst.msk [vmem:[%s3647_s10 + $0xc] sm:$0xf] %vm2783_vm12, %v2770_v26  ;;  %v2700_v7 = vunpack.c.l.b16 %v3080_v56 }
 0x268   : > { %v2701_v53 = vunpack.c.l.b16 %v3081_v40  ;;  %v2381_v32 = vsel %vm2191_vm4, %v2134_v24, -inf  ;;  %v2702_v63 = vunpack.c.l.b16 %v3082_v60 }
 0x269   : > { %v2763_v8 = vsel %vm2710_vm8, %v2700_v7, %v4207_v57  ;;  %v2383_v45 = vmax.f32 %v2381_v32, %v2382_v18 }
 0x26a   : > { %v2764_v12 = vsel %vm2712_vm9, %v2701_v53, %v2763_v8 }
 0x26b   : > { %v2765_v4 = vsel %vm2714_vm10, %v2702_v63, %v2764_v12  ;;  %v3083_v14 = vpack.c.bf16 %v2383_v45, %v2383_v45 }
 0x26d   : > { %v2703_v9 = vunpack.c.l.b16 %v3083_v14 }
 0x26f   : > { %v2766_v6 = vsel %vm2716_vm11, %v2703_v9, %v2765_v4 }
 0x270   : > { %v2774_v57 = vpack.c.b16 %v2766_v6, %v2766_v6 }
 0x272   : > { %2791 = vst.msk [vmem:[%s3647_s10 + $0x1c] sm:$0xf] %vm2783_vm12, %v2774_v57 }
 0x273   : > { %3229 = shalt.err (!%p3226_p5)
}
 0x274   : > { %s3230_s7 = scalar_lea.hbm %s4246_s29, 512  ;;  %s3234_s10 = scalar_lea.hbm %s4303_s3, 1024 }
 0x275   : > { %p3231_p6 = scmp.ne.s32.totalorder %s4246_s29, %s3230_s7  ;;  %p3235_p10 = scmp.lt.u32.totalorder %s4246_s29, %s4303_s3 }
 0x276   : > { %p3236_p11 = scmp.lt.u32.totalorder %s3234_s10, %s3230_s7  ;;  %p3238_p13 = scmp.lt.u32.totalorder %s3230_s7, %s4246_s29 }
 0x277   : > { %p3232_p7 = pnand %p3231_p6, %p3361_p4 }
 0x278   : > { %p3237_p12 = por %p3236_p11, %p3235_p10 }
 0x279   : > { %p3233_p9 = pneg %p3232_p7 }
 0x27a   : > { %p3239_p0 = por %p3238_p13, %p3237_p12 }
 0x27c   : > { %p3240_p1 = pnand %p3239_p0, %p3233_p9 }
 0x27e   : > { %3243 = shalt.err (!%p3240_p1)
}
 0x27f   : > { %s3299_s19 = smov 64   ;;  %s3300_s21 = smov 4  }
 0x280   : > { %3138 = dma.vmem_to_hbm [thread:$0]  (%p3361_p4), %s4248_s26, 512, %s4246_s29, %s4254_s30, %s3299_s19, %s3299_s19, %s3300_s21  }
 0x281 PF: > { %p3144_p2 = scmp.ge.s32.totalorder %s3294_s17, 2  ;;  %s2822_s23 = sand.u32 1, %s3274_s12  }
 0x282   : > { %s2823_s27 = scalar_lea.sflag [#allocation3], %s2822_s23 }
 0x283   : > { %p3141_p3 = pnand %p3144_p2, %p3368_p8 }
 0x285   : > { %3269 = dma.done.wait (!%p3141_p3), %s2823_s27, 512  }
 0x286   : > { %3271 = vsyncadd (!%p3141_p3), %s2823_s27, 4294966784  ;;  %s16_s17 = sadd.s32 1, %s3294_s17   ;;  %s4306_s12 = smov %s3278_s13 }
 0x287   : > { %p13_p5 = scmp.ge.s32.totalorder %s16_s17, 4   ;;  %s4307_s13 = smov %s3282_s14 }
 0x288   : > { %s4308_s14 = smov %s3374_s25  ;;  %s4309_s15 = smov %s3290_s16 }
 0x289   : > { %s4310_s16 = smov %s4312_s20  ;;  %15 = sbr.rel (!%p13_p5) target bundleno = 4 (0x4), region = 73 }
 0x290   :  { %2828 = vsyncpa [#allocation3], 1 }
 0x291   :  { %2830 = vsyncpa [#allocation3 + $0x1], 1 }

</bundles_post_ra>
